<compile_context>
chip_gen: v6e
topology: v6e:2x2x1
jax: 0.10.0
libtpu: 0.0.40
codegen_flags: <defaults>
</compile_context>

<pallas_src>
import functools

import numpy as np
import jax
import jax.numpy as jnp
from jax import lax
from jax.experimental import pallas as pl
from jax.experimental.pallas import tpu as pltpu


# ----------------------------------------------------------------------------
# Pallas kernel: encoder + T-step Euler rollout of f, then batched output map h
# ----------------------------------------------------------------------------
def _subnet_kernel(T, Bp, nx, nu, ny, hidden, d_enc, wl, bl,
                   z_ref, u_ref, dt_ref, w_ref, b_ref, y_ref):
    f32 = jnp.float32
    hx = hidden + nx
    hy = hidden + ny

    def load_w(name, r, c):                      # bf16 weight block (static 16-aligned rows)
        o = wl[name]
        return w_ref[o:o + r, 0:c]

    def load_b(name, c):                         # f32 bias row (1, c), 8-aligned
        o = bl[name]
        return b_ref[o:o + 1, 0:c]

    def mm(a, wt):                               # single bf16 MXU pass, f32 accumulate
        return jnp.dot(a.astype(jnp.bfloat16), wt, preferred_element_type=f32)

    # ---- weights / biases loaded once from the packed slabs ----
    We1 = load_w("We1", d_enc, hx)
    We2 = load_w("We2", hidden, hidden)
    Weo = load_w("Weo", hidden, nx)
    Wfx = load_w("Wfx", nx, hx)
    Wfu = load_w("Wfu", nu, hx)
    Wf2 = load_w("Wf2", hidden, hidden)
    Wfo = load_w("Wfo", hidden, nx)
    Wh1 = load_w("Wh1", nx, hy)
    Wh2 = load_w("Wh2", hidden, hidden)
    Who = load_w("Who", hidden, ny)

    be1 = load_b("be1", hx)
    be2 = load_b("be2", hidden)
    beo = load_b("beo", nx)
    bf1 = load_b("bf1", hx)
    bf2 = load_b("bf2", hidden)
    bfo = load_b("bfo", nx)
    bh1 = load_b("bh1", hy)
    bh2 = load_b("bh2", hidden)
    bho = load_b("bho", ny)

    # ---- encoder: x0 = MLP_res_net(z_enc); first matmul fused as [W1 | Wlin] ----
    e1 = mm(z_ref[...], We1) + be1                              # (Bp, hidden+nx)
    eh2 = jnp.maximum(mm(jnp.maximum(e1[:, :hidden], 0.0), We2) + be2, 0.0)
    x = e1[:, hidden:] + mm(eh2, Weo) + beo                     # (Bp, nx), f32 state

    # ---- u-dependent half of f's fused first matmul, for all T at once ----
    # row t*Bp + b  ==  u[b, t] @ Wf_first[nx:] + bf_first      (8-aligned per-step rows)
    u_pre = mm(u_ref[...], Wfu) + bf1                           # (T*Bp, hidden+nx)

    # loop invariants hoisted (broadcast once, not per step)
    bf2_b = jnp.broadcast_to(bf2, (Bp, hidden))
    bfo_b = jnp.broadcast_to(bfo, (Bp, nx))

    # ---- rollout, fully unrolled; only f() is on the serial chain (3 MXU pushes/step) ----
    xs = []
    for t in range(T):
        xs.append(x)                                            # stays in vregs
        ft = mm(x, Wfx) + u_pre[t * Bp:(t + 1) * Bp, :]         # fused [h1 | lin] pre-act
        fh2 = jnp.maximum(mm(jnp.maximum(ft[:, :hidden], 0.0), Wf2) + bf2_b, 0.0)
        dx = ft[:, hidden:] + mm(fh2, Wfo) + bfo_b              # f(x_t, u_t)
        x = x + dt_ref[t] * dx                                  # forward-Euler integrator

    # ---- output map h applied once to all T*Bp states; single output store ----
    xs_all = jnp.concatenate(xs, axis=0)                        # (T*Bp, nx)
    h1 = mm(xs_all, Wh1) + bh1                                  # (T*Bp, hidden+ny)
    hh2 = jnp.maximum(mm(jnp.maximum(h1[:, :hidden], 0.0), Wh2) + bh2, 0.0)
    y_ref[...] = h1[:, hidden:] + mm(hh2, Who) + bho


# ----------------------------------------------------------------------------
# one-time parameter prep: fuse, split, cast, pack into two VMEM slabs
# ----------------------------------------------------------------------------
def _pack(arrays, dtype, align):
    """Pack named 2-D arrays into one lane-padded slab with `align`-aligned row offsets."""
    ncol = max(a.shape[1] for _, a in arrays)
    ncol = ((ncol + 127) // 128) * 128
    offs, nrow = {}, 0
    for name, a in arrays:
        offs[name] = nrow
        nrow += ((a.shape[0] + align - 1) // align) * align
    slab = np.zeros((max(nrow, align), ncol), np.float32)
    for name, a in arrays:
        o = offs[name]
        slab[o:o + a.shape[0], :a.shape[1]] = np.asarray(a, np.float32)
    return jnp.asarray(slab, dtype=dtype), offs


def prepare_subnet_params(params):
    """Host-side, one-time: fuse [W1 | Wlin] per MLP, split f's first matmul into x/u
    halves, cast weights to bf16, pack weights + biases into two slabs."""
    def fuse(p):
        Wlin, blin, W1, b1, W2, b2, Wout, bout = [np.asarray(q, np.float32) for q in p]
        return (np.concatenate([W1, Wlin], axis=1),
                np.concatenate([b1.reshape(1, -1), blin.reshape(1, -1)], axis=1),
                W2, b2.reshape(1, -1), Wout, bout.reshape(1, -1))

    We1, be1, We2, be2, Weo, beo = fuse(params["encoder"])
    Wf1, bf1, Wf2, bf2, Wfo, bfo = fuse(params["f"])
    Wh1, bh1, Wh2, bh2, Who, bho = fuse(params["h"])

    nx = int(params["f"][0].shape[1])
    nu = int(Wf1.shape[0]) - nx
    ny = int(params["h"][0].shape[1])
    hidden = int(params["f"][2].shape[1])
    d_enc = int(We1.shape[0])
    # split f's fused first matmul: dot([x,u], W) = dot(x, W[:nx]) + dot(u, W[nx:])
    Wfx, Wfu = Wf1[:nx], Wf1[nx:]

    wslab, wl = _pack([("We1", We1), ("We2", We2), ("Weo", Weo),
                       ("Wfx", Wfx), ("Wfu", Wfu), ("Wf2", Wf2), ("Wfo", Wfo),
                       ("Wh1", Wh1), ("Wh2", Wh2), ("Who", Who)],
                      jnp.bfloat16, align=16)
    bslab, bl = _pack([("be1", be1), ("be2", be2), ("beo", beo),
                       ("bf1", bf1), ("bf2", bf2), ("bfo", bfo),
                       ("bh1", bh1), ("bh2", bh2), ("bho", bho)],
                      jnp.float32, align=8)
    dims = dict(nx=nx, nu=nu, ny=ny, hidden=hidden, d_enc=d_enc)
    return wslab, bslab, wl, bl, dims


def make_subnet_ists_forward(params):
    """Returns a jitted forward(upast, ypast, ufuture, yfuture, dt_past, dt_future)
    that mirrors SUBNET_ISTS.forward (use_encoder=True, feedthrough=False)."""
    wslab, bslab, wl, bl, dims = prepare_subnet_params(params)
    nx, nu, ny = dims["nx"], dims["nu"], dims["ny"]
    hidden, d_enc = dims["hidden"], dims["d_enc"]

    @jax.jit
    def forward(wslab, bslab, upast, ypast, ufuture, yfuture,
                delta_t_past, delta_t_future):
        del yfuture  # unused by the forward pass (as in the PyTorch module)
        f32 = jnp.float32
        B, T, _ = ufuture.shape
        Bp = ((B + 7) // 8) * 8          # pad batch so every per-step tile is sublane-aligned

        # encoder input: flatten + concat per sample (glue, jitted with the kernel call)
        z = jnp.concatenate([upast.reshape(B, -1), ypast.reshape(B, -1),
                             delta_t_past.reshape(B, -1)], axis=-1).astype(f32)
        z_p = jnp.pad(z, ((0, Bp - B), (0, 0)))                        # (Bp, d_enc)

        u_tm = jnp.swapaxes(ufuture, 0, 1).astype(f32)                 # (T, B, nu) time-major
        u_p = jnp.pad(u_tm, ((0, 0), (0, Bp - B), (0, 0))).reshape(T * Bp, nu)

        dt = jnp.swapaxes(delta_t_future.reshape(B, T), 0, 1).astype(f32)   # (T, B)
        dt_p = jnp.pad(dt, ((0, 0), (0, Bp - B)))                      # (T, Bp)
        dt_b = jnp.broadcast_to(dt_p[:, :, None], (T, Bp, nx))         # pre-broadcast once

        vm = pl.BlockSpec(memory_space=pltpu.MemorySpace.VMEM)
        y_flat = pl.pallas_call(
            functools.partial(_subnet_kernel, T, Bp, nx, nu, ny, hidden, d_enc, wl, bl),
            out_shape=jax.ShapeDtypeStruct((T * Bp, ny), f32),
            in_specs=[vm] * 5,
            out_specs=vm,
        )(z_p, u_p, dt_b, wslab, bslab)

        # time-major padded (T*Bp, ny) -> (B, T, ny)
        return jnp.swapaxes(y_flat.reshape(T, Bp, ny)[:, :B], 0, 1)

    return functools.partial(forward, wslab, bslab)


# ----------------------------------------------------------------------------
# pure-JAX reference (unfused weights, literal module structure)
# ----------------------------------------------------------------------------
def _mlp_res_ref(z, p, mxu_dtype):
    Wlin, blin, W1, b1, W2, b2, Wout, bout = p

    def dot(a, w):
        return jnp.dot(a.astype(mxu_dtype), w.astype(mxu_dtype),
                       preferred_element_type=jnp.float32,
                       precision=lax.Precision.HIGHEST)

    lin = dot(z, Wlin) + blin
    h1 = jnp.maximum(dot(z, W1) + b1, 0.0)
    h2 = jnp.maximum(dot(h1, W2) + b2, 0.0)
    return lin + dot(h2, Wout) + bout


def reference_forward(params, upast, ypast, ufuture, yfuture,
                      delta_t_past, delta_t_future, mxu_dtype=jnp.float32):
    del yfuture
    B, T, _ = ufuture.shape
    z = jnp.concatenate([upast.reshape(B, -1), ypast.reshape(B, -1),
                         delta_t_past.reshape(B, -1)], axis=-1)
    x = _mlp_res_ref(z, params["encoder"], mxu_dtype)
    dtf = delta_t_future.reshape(B, T)
    xs = []
    for t in range(T):
        xs.append(x)
        zfu = jnp.concatenate([x, ufuture[:, t]], axis=-1)
        x = x + dtf[:, t][:, None] * _mlp_res_ref(zfu, params["f"], mxu_dtype)
    xs = jnp.stack(xs, axis=1)                                   # (B, T, nx)
    y_flat = _mlp_res_ref(xs.reshape(B * T, -1), params["h"], mxu_dtype)
    return y_flat.reshape(B, T, -1)


# ----------------------------------------------------------------------------
# deterministic parameter init (shapes from SUBNET_ISTS.__init__)
# ----------------------------------------------------------------------------
def _init_mlp(key, d_in, d_out, hidden):
    ks = jax.random.split(key, 8)
    f32 = jnp.float32
    Wlin = jax.random.normal(ks[0], (d_in, d_out), f32) / np.sqrt(d_in)
    blin = 0.1 * jax.random.normal(ks[1], (1, d_out), f32)
    W1 = jax.random.normal(ks[2], (d_in, hidden), f32) / np.sqrt(d_in)
    b1 = 0.1 * jax.random.normal(ks[3], (1, hidden), f32)
    W2 = jax.random.normal(ks[4], (hidden, hidden), f32) / np.sqrt(hidden)
    b2 = 0.1 * jax.random.normal(ks[5], (1, hidden), f32)
    Wout = jax.random.normal(ks[6], (hidden, d_out), f32) / np.sqrt(hidden)
    bout = 0.1 * jax.random.normal(ks[7], (1, d_out), f32)
    return (Wlin, blin, W1, b1, W2, b2, Wout, bout)


if __name__ == "__main__":
    # small shapes consistent with the module's forward
    B, T = 2, 8
    nx, nu, ny = 8, 2, 2
    na = nb = 4
    hidden = 32
    npast = max(na, nb)

    key = jax.random.PRNGKey(0)
    k_enc, k_f, k_h, k_up, k_yp, k_uf, k_yf, k_dt = jax.random.split(key, 8)

    params = {
        # encoder MLP_res_net_with_time: input [(nb, nu), (na, ny), (npast, 1)] -> nx
        "encoder": _init_mlp(k_enc, nb * nu + na * ny + npast, nx, hidden),
        # f: MLP_res_net([nx, nu] -> nx)
        "f": _init_mlp(k_f, nx + nu, nx, hidden),
        # h: MLP_res_net(nx -> ny) (feedthrough=False)
        "h": _init_mlp(k_h, nx, ny, hidden),
    }

    upast = jax.random.normal(k_up, (B, nb, nu), jnp.float32)
    ypast = jax.random.normal(k_yp, (B, na, ny), jnp.float32)
    ufuture = jax.random.normal(k_uf, (B, T, nu), jnp.float32)
    yfuture = jax.random.normal(k_yf, (B, T, ny), jnp.float32)   # unused by forward
    delta_t_past = jnp.full((B, npast, 1), 0.05, jnp.float32)
    delta_t_future = 0.02 + 0.04 * jax.random.uniform(k_dt, (B, T), jnp.float32)

    fwd = make_subnet_ists_forward(params)
    y = jax.block_until_ready(fwd(upast, ypast, ufuture, yfuture,
                                  delta_t_past, delta_t_future))
    assert y.shape == (B, T, ny), y.shape

    # Structural check: reference with unfused weights / per-step concat / literal module
    # ordering, at the SAME MXU precision (bf16 operands, f32 accumulate) -> only
    # summation-regrouping noise is expected.
    y_bf = reference_forward(params, upast, ypast, ufuture, yfuture,
                             delta_t_past, delta_t_future, mxu_dtype=jnp.bfloat16)
    err = float(jnp.max(jnp.abs(y - y_bf)))
    assert np.isfinite(err) and err < 2e-3, f"max abs err vs bf16-matched reference: {err}"

    # Loose sanity check against the true-f32 reference (bounds bf16 rollout drift).
    y_f32 = reference_forward(params, upast, ypast, ufuture, yfuture,
                              delta_t_past, delta_t_future, mxu_dtype=jnp.float32)
    err32 = float(jnp.max(jnp.abs(y - y_f32)))
    assert np.isfinite(err32) and err32 < 1.0, f"max abs err vs f32 reference: {err32}"

    print("KERNEL_OK")
</pallas_src>

<mosaic_0001>
module attributes {stable_mosaic.version = 11 : i64} {
  func.func @_subnet_kernel(%arg0: memref<8x20xf32, #tpu.memory_space<vmem>>, %arg1: memref<64x2xf32, #tpu.memory_space<vmem>>, %arg2: memref<8x8x8xf32, #tpu.memory_space<vmem>>, %arg3: memref<272x128xbf16, #tpu.memory_space<vmem>>, %arg4: memref<72x128xf32, #tpu.memory_space<vmem>>, %arg5: memref<64x2xf32, #tpu.memory_space<vmem>>) attributes {dimension_semantics = [], scalar_prefetch = 0 : i64, scratch_operands = 0 : i64, tpu.core_type = #tpu.core_type<tc>} {
    %c0 = arith.constant 0 : index
    %c0_0 = arith.constant 0 : index
    %0 = vector.load %arg3[%c0, %c0_0] : memref<272x128xbf16, #tpu.memory_space<vmem>>, vector<20x40xbf16>
    %c32 = arith.constant 32 : index
    %c0_1 = arith.constant 0 : index
    %1 = vector.load %arg3[%c32, %c0_1] : memref<272x128xbf16, #tpu.memory_space<vmem>>, vector<32x32xbf16>
    %c64 = arith.constant 64 : index
    %c0_2 = arith.constant 0 : index
    %2 = vector.load %arg3[%c64, %c0_2] : memref<272x128xbf16, #tpu.memory_space<vmem>>, vector<32x8xbf16>
    %c96 = arith.constant 96 : index
    %c0_3 = arith.constant 0 : index
    %3 = vector.load %arg3[%c96, %c0_3] : memref<272x128xbf16, #tpu.memory_space<vmem>>, vector<8x40xbf16>
    %c112 = arith.constant 112 : index
    %c0_4 = arith.constant 0 : index
    %4 = vector.load %arg3[%c112, %c0_4] : memref<272x128xbf16, #tpu.memory_space<vmem>>, vector<2x40xbf16>
    %c128 = arith.constant 128 : index
    %c0_5 = arith.constant 0 : index
    %5 = vector.load %arg3[%c128, %c0_5] : memref<272x128xbf16, #tpu.memory_space<vmem>>, vector<32x32xbf16>
    %c160 = arith.constant 160 : index
    %c0_6 = arith.constant 0 : index
    %6 = vector.load %arg3[%c160, %c0_6] : memref<272x128xbf16, #tpu.memory_space<vmem>>, vector<32x8xbf16>
    %c192 = arith.constant 192 : index
    %c0_7 = arith.constant 0 : index
    %7 = vector.load %arg3[%c192, %c0_7] : memref<272x128xbf16, #tpu.memory_space<vmem>>, vector<8x34xbf16>
    %c208 = arith.constant 208 : index
    %c0_8 = arith.constant 0 : index
    %8 = vector.load %arg3[%c208, %c0_8] : memref<272x128xbf16, #tpu.memory_space<vmem>>, vector<32x32xbf16>
    %c240 = arith.constant 240 : index
    %c0_9 = arith.constant 0 : index
    %9 = vector.load %arg3[%c240, %c0_9] : memref<272x128xbf16, #tpu.memory_space<vmem>>, vector<32x2xbf16>
    %c0_10 = arith.constant 0 : index
    %c0_11 = arith.constant 0 : index
    %10 = vector.load %arg4[%c0_10, %c0_11] : memref<72x128xf32, #tpu.memory_space<vmem>>, vector<1x40xf32>
    %c8 = arith.constant 8 : index
    %c0_12 = arith.constant 0 : index
    %11 = vector.load %arg4[%c8, %c0_12] : memref<72x128xf32, #tpu.memory_space<vmem>>, vector<1x32xf32>
    %c16 = arith.constant 16 : index
    %c0_13 = arith.constant 0 : index
    %12 = vector.load %arg4[%c16, %c0_13] : memref<72x128xf32, #tpu.memory_space<vmem>>, vector<1x8xf32>
    %c24 = arith.constant 24 : index
    %c0_14 = arith.constant 0 : index
    %13 = vector.load %arg4[%c24, %c0_14] : memref<72x128xf32, #tpu.memory_space<vmem>>, vector<1x40xf32>
    %c32_15 = arith.constant 32 : index
    %c0_16 = arith.constant 0 : index
    %14 = vector.load %arg4[%c32_15, %c0_16] : memref<72x128xf32, #tpu.memory_space<vmem>>, vector<1x32xf32>
    %c40 = arith.constant 40 : index
    %c0_17 = arith.constant 0 : index
    %15 = vector.load %arg4[%c40, %c0_17] : memref<72x128xf32, #tpu.memory_space<vmem>>, vector<1x8xf32>
    %c48 = arith.constant 48 : index
    %c0_18 = arith.constant 0 : index
    %16 = vector.load %arg4[%c48, %c0_18] : memref<72x128xf32, #tpu.memory_space<vmem>>, vector<1x34xf32>
    %c56 = arith.constant 56 : index
    %c0_19 = arith.constant 0 : index
    %17 = vector.load %arg4[%c56, %c0_19] : memref<72x128xf32, #tpu.memory_space<vmem>>, vector<1x32xf32>
    %c64_20 = arith.constant 64 : index
    %c0_21 = arith.constant 0 : index
    %18 = vector.load %arg4[%c64_20, %c0_21] : memref<72x128xf32, #tpu.memory_space<vmem>>, vector<1x2xf32>
    %c0_22 = arith.constant 0 : index
    %c0_23 = arith.constant 0 : index
    %19 = vector.load %arg0[%c0_22, %c0_23] : memref<8x20xf32, #tpu.memory_space<vmem>>, vector<8x20xf32>
    %20 = arith.truncf %19 : vector<8x20xf32> to vector<8x20xbf16>
    %cst = arith.constant dense<0.000000e+00> : vector<8x40xf32>
    %21 = tpu.matmul %20, %0, %cst {dimension_numbers = #tpu.dot_dimension_numbers<[1], [0], [0], [1], [0, 0, 1, 1], [], []>} : vector<8x20xbf16>, vector<20x40xbf16>, vector<8x40xf32> -> vector<8x40xf32>
    %22 = vector.broadcast %10 : vector<1x40xf32> to vector<8x40xf32>
    %23 = arith.addf %21, %22 : vector<8x40xf32>
    %24 = vector.extract_strided_slice %23 {offsets = [0, 0], sizes = [8, 32], strides = [1, 1]} : vector<8x40xf32> to vector<8x32xf32>
    %cst_24 = arith.constant 0.000000e+00 : f32
    %25 = vector.broadcast %cst_24 : f32 to vector<8x32xf32>
    %26 = arith.maximumf %24, %25 : vector<8x32xf32>
    %27 = arith.truncf %26 : vector<8x32xf32> to vector<8x32xbf16>
    %cst_25 = arith.constant dense<0.000000e+00> : vector<8x32xf32>
    %28 = tpu.matmul %27, %1, %cst_25 {dimension_numbers = #tpu.dot_dimension_numbers<[1], [0], [0], [1], [0, 0, 1, 1], [], []>} : vector<8x32xbf16>, vector<32x32xbf16>, vector<8x32xf32> -> vector<8x32xf32>
    %29 = vector.broadcast %11 : vector<1x32xf32> to vector<8x32xf32>
    %30 = arith.addf %28, %29 : vector<8x32xf32>
    %cst_26 = arith.constant 0.000000e+00 : f32
    %31 = vector.broadcast %cst_26 : f32 to vector<8x32xf32>
    %32 = arith.maximumf %30, %31 : vector<8x32xf32>
    %33 = vector.extract_strided_slice %23 {offsets = [0, 32], sizes = [8, 8], strides = [1, 1]} : vector<8x40xf32> to vector<8x8xf32>
    %34 = arith.truncf %32 : vector<8x32xf32> to vector<8x32xbf16>
    %cst_27 = arith.constant dense<0.000000e+00> : vector<8x8xf32>
    %35 = tpu.matmul %34, %2, %cst_27 {dimension_numbers = #tpu.dot_dimension_numbers<[1], [0], [0], [1], [0, 0, 1, 1], [], []>} : vector<8x32xbf16>, vector<32x8xbf16>, vector<8x8xf32> -> vector<8x8xf32>
    %36 = arith.addf %33, %35 : vector<8x8xf32>
    %37 = vector.broadcast %12 : vector<1x8xf32> to vector<8x8xf32>
    %38 = arith.addf %36, %37 : vector<8x8xf32>
    %c0_28 = arith.constant 0 : index
    %c0_29 = arith.constant 0 : index
    %39 = vector.load %arg1[%c0_28, %c0_29] : memref<64x2xf32, #tpu.memory_space<vmem>>, vector<64x2xf32>
    %40 = arith.truncf %39 : vector<64x2xf32> to vector<64x2xbf16>
    %cst_30 = arith.constant dense<0.000000e+00> : vector<64x40xf32>
    %41 = tpu.matmul %40, %4, %cst_30 {dimension_numbers = #tpu.dot_dimension_numbers<[1], [0], [0], [1], [0, 0, 1, 1], [], []>} : vector<64x2xbf16>, vector<2x40xbf16>, vector<64x40xf32> -> vector<64x40xf32>
    %42 = vector.broadcast %13 : vector<1x40xf32> to vector<64x40xf32>
    %43 = arith.addf %41, %42 : vector<64x40xf32>
    %44 = vector.shape_cast %14 : vector<1x32xf32> to vector<1x32xf32>
    %45 = vector.broadcast %44 : vector<1x32xf32> to vector<8x32xf32>
    %46 = vector.shape_cast %15 : vector<1x8xf32> to vector<1x8xf32>
    %47 = vector.broadcast %46 : vector<1x8xf32> to vector<8x8xf32>
    %48 = arith.truncf %38 : vector<8x8xf32> to vector<8x8xbf16>
    %cst_31 = arith.constant dense<0.000000e+00> : vector<8x40xf32>
    %49 = tpu.matmul %48, %3, %cst_31 {dimension_numbers = #tpu.dot_dimension_numbers<[1], [0], [0], [1], [0, 0, 1, 1], [], []>} : vector<8x8xbf16>, vector<8x40xbf16>, vector<8x40xf32> -> vector<8x40xf32>
    %50 = vector.extract_strided_slice %43 {offsets = [0, 0], sizes = [8, 40], strides = [1, 1]} : vector<64x40xf32> to vector<8x40xf32>
    %51 = arith.addf %49, %50 : vector<8x40xf32>
    %52 = vector.extract_strided_slice %51 {offsets = [0, 0], sizes = [8, 32], strides = [1, 1]} : vector<8x40xf32> to vector<8x32xf32>
    %cst_32 = arith.constant 0.000000e+00 : f32
    %53 = vector.broadcast %cst_32 : f32 to vector<8x32xf32>
    %54 = arith.maximumf %52, %53 : vector<8x32xf32>
    %55 = arith.truncf %54 : vector<8x32xf32> to vector<8x32xbf16>
    %cst_33 = arith.constant dense<0.000000e+00> : vector<8x32xf32>
    %56 = tpu.matmul %55, %5, %cst_33 {dimension_numbers = #tpu.dot_dimension_numbers<[1], [0], [0], [1], [0, 0, 1, 1], [], []>} : vector<8x32xbf16>, vector<32x32xbf16>, vector<8x32xf32> -> vector<8x32xf32>
    %57 = arith.addf %56, %45 : vector<8x32xf32>
    %cst_34 = arith.constant 0.000000e+00 : f32
    %58 = vector.broadcast %cst_34 : f32 to vector<8x32xf32>
    %59 = arith.maximumf %57, %58 : vector<8x32xf32>
    %60 = vector.extract_strided_slice %51 {offsets = [0, 32], sizes = [8, 8], strides = [1, 1]} : vector<8x40xf32> to vector<8x8xf32>
    %61 = arith.truncf %59 : vector<8x32xf32> to vector<8x32xbf16>
    %cst_35 = arith.constant dense<0.000000e+00> : vector<8x8xf32>
    %62 = tpu.matmul %61, %6, %cst_35 {dimension_numbers = #tpu.dot_dimension_numbers<[1], [0], [0], [1], [0, 0, 1, 1], [], []>} : vector<8x32xbf16>, vector<32x8xbf16>, vector<8x8xf32> -> vector<8x8xf32>
    %63 = arith.addf %60, %62 : vector<8x8xf32>
    %64 = arith.addf %63, %47 : vector<8x8xf32>
    %c0_36 = arith.constant 0 : index
    %c0_37 = arith.constant 0 : index
    %c0_38 = arith.constant 0 : index
    %65 = vector.load %arg2[%c0_36, %c0_37, %c0_38] : memref<8x8x8xf32, #tpu.memory_space<vmem>>, vector<1x8x8xf32>
    %66 = vector.shape_cast %65 : vector<1x8x8xf32> to vector<8x8xf32>
    %67 = arith.mulf %66, %64 : vector<8x8xf32>
    %68 = arith.addf %38, %67 : vector<8x8xf32>
    %69 = arith.truncf %68 : vector<8x8xf32> to vector<8x8xbf16>
    %cst_39 = arith.constant dense<0.000000e+00> : vector<8x40xf32>
    %70 = tpu.matmul %69, %3, %cst_39 {dimension_numbers = #tpu.dot_dimension_numbers<[1], [0], [0], [1], [0, 0, 1, 1], [], []>} : vector<8x8xbf16>, vector<8x40xbf16>, vector<8x40xf32> -> vector<8x40xf32>
    %71 = vector.extract_strided_slice %43 {offsets = [8, 0], sizes = [8, 40], strides = [1, 1]} : vector<64x40xf32> to vector<8x40xf32>
    %72 = arith.addf %70, %71 : vector<8x40xf32>
    %73 = vector.extract_strided_slice %72 {offsets = [0, 0], sizes = [8, 32], strides = [1, 1]} : vector<8x40xf32> to vector<8x32xf32>
    %cst_40 = arith.constant 0.000000e+00 : f32
    %74 = vector.broadcast %cst_40 : f32 to vector<8x32xf32>
    %75 = arith.maximumf %73, %74 : vector<8x32xf32>
    %76 = arith.truncf %75 : vector<8x32xf32> to vector<8x32xbf16>
    %cst_41 = arith.constant dense<0.000000e+00> : vector<8x32xf32>
    %77 = tpu.matmul %76, %5, %cst_41 {dimension_numbers = #tpu.dot_dimension_numbers<[1], [0], [0], [1], [0, 0, 1, 1], [], []>} : vector<8x32xbf16>, vector<32x32xbf16>, vector<8x32xf32> -> vector<8x32xf32>
    %78 = arith.addf %77, %45 : vector<8x32xf32>
    %cst_42 = arith.constant 0.000000e+00 : f32
    %79 = vector.broadcast %cst_42 : f32 to vector<8x32xf32>
    %80 = arith.maximumf %78, %79 : vector<8x32xf32>
    %81 = vector.extract_strided_slice %72 {offsets = [0, 32], sizes = [8, 8], strides = [1, 1]} : vector<8x40xf32> to vector<8x8xf32>
    %82 = arith.truncf %80 : vector<8x32xf32> to vector<8x32xbf16>
    %cst_43 = arith.constant dense<0.000000e+00> : vector<8x8xf32>
    %83 = tpu.matmul %82, %6, %cst_43 {dimension_numbers = #tpu.dot_dimension_numbers<[1], [0], [0], [1], [0, 0, 1, 1], [], []>} : vector<8x32xbf16>, vector<32x8xbf16>, vector<8x8xf32> -> vector<8x8xf32>
    %84 = arith.addf %81, %83 : vector<8x8xf32>
    %85 = arith.addf %84, %47 : vector<8x8xf32>
    %c1 = arith.constant 1 : index
    %c0_44 = arith.constant 0 : index
    %c0_45 = arith.constant 0 : index
    %86 = vector.load %arg2[%c1, %c0_44, %c0_45] : memref<8x8x8xf32, #tpu.memory_space<vmem>>, vector<1x8x8xf32>
    %87 = vector.shape_cast %86 : vector<1x8x8xf32> to vector<8x8xf32>
    %88 = arith.mulf %87, %85 : vector<8x8xf32>
    %89 = arith.addf %68, %88 : vector<8x8xf32>
    %90 = arith.truncf %89 : vector<8x8xf32> to vector<8x8xbf16>
    %cst_46 = arith.constant dense<0.000000e+00> : vector<8x40xf32>
    %91 = tpu.matmul %90, %3, %cst_46 {dimension_numbers = #tpu.dot_dimension_numbers<[1], [0], [0], [1], [0, 0, 1, 1], [], []>} : vector<8x8xbf16>, vector<8x40xbf16>, vector<8x40xf32> -> vector<8x40xf32>
    %92 = vector.extract_strided_slice %43 {offsets = [16, 0], sizes = [8, 40], strides = [1, 1]} : vector<64x40xf32> to vector<8x40xf32>
    %93 = arith.addf %91, %92 : vector<8x40xf32>
    %94 = vector.extract_strided_slice %93 {offsets = [0, 0], sizes = [8, 32], strides = [1, 1]} : vector<8x40xf32> to vector<8x32xf32>
    %cst_47 = arith.constant 0.000000e+00 : f32
    %95 = vector.broadcast %cst_47 : f32 to vector<8x32xf32>
    %96 = arith.maximumf %94, %95 : vector<8x32xf32>
    %97 = arith.truncf %96 : vector<8x32xf32> to vector<8x32xbf16>
    %cst_48 = arith.constant dense<0.000000e+00> : vector<8x32xf32>
    %98 = tpu.matmul %97, %5, %cst_48 {dimension_numbers = #tpu.dot_dimension_numbers<[1], [0], [0], [1], [0, 0, 1, 1], [], []>} : vector<8x32xbf16>, vector<32x32xbf16>, vector<8x32xf32> -> vector<8x32xf32>
    %99 = arith.addf %98, %45 : vector<8x32xf32>
    %cst_49 = arith.constant 0.000000e+00 : f32
    %100 = vector.broadcast %cst_49 : f32 to vector<8x32xf32>
    %101 = arith.maximumf %99, %100 : vector<8x32xf32>
    %102 = vector.extract_strided_slice %93 {offsets = [0, 32], sizes = [8, 8], strides = [1, 1]} : vector<8x40xf32> to vector<8x8xf32>
    %103 = arith.truncf %101 : vector<8x32xf32> to vector<8x32xbf16>
    %cst_50 = arith.constant dense<0.000000e+00> : vector<8x8xf32>
    %104 = tpu.matmul %103, %6, %cst_50 {dimension_numbers = #tpu.dot_dimension_numbers<[1], [0], [0], [1], [0, 0, 1, 1], [], []>} : vector<8x32xbf16>, vector<32x8xbf16>, vector<8x8xf32> -> vector<8x8xf32>
    %105 = arith.addf %102, %104 : vector<8x8xf32>
    %106 = arith.addf %105, %47 : vector<8x8xf32>
    %c2 = arith.constant 2 : index
    %c0_51 = arith.constant 0 : index
    %c0_52 = arith.constant 0 : index
    %107 = vector.load %arg2[%c2, %c0_51, %c0_52] : memref<8x8x8xf32, #tpu.memory_space<vmem>>, vector<1x8x8xf32>
    %108 = vector.shape_cast %107 : vector<1x8x8xf32> to vector<8x8xf32>
    %109 = arith.mulf %108, %106 : vector<8x8xf32>
    %110 = arith.addf %89, %109 : vector<8x8xf32>
    %111 = arith.truncf %110 : vector<8x8xf32> to vector<8x8xbf16>
    %cst_53 = arith.constant dense<0.000000e+00> : vector<8x40xf32>
    %112 = tpu.matmul %111, %3, %cst_53 {dimension_numbers = #tpu.dot_dimension_numbers<[1], [0], [0], [1], [0, 0, 1, 1], [], []>} : vector<8x8xbf16>, vector<8x40xbf16>, vector<8x40xf32> -> vector<8x40xf32>
    %113 = vector.extract_strided_slice %43 {offsets = [24, 0], sizes = [8, 40], strides = [1, 1]} : vector<64x40xf32> to vector<8x40xf32>
    %114 = arith.addf %112, %113 : vector<8x40xf32>
    %115 = vector.extract_strided_slice %114 {offsets = [0, 0], sizes = [8, 32], strides = [1, 1]} : vector<8x40xf32> to vector<8x32xf32>
    %cst_54 = arith.constant 0.000000e+00 : f32
    %116 = vector.broadcast %cst_54 : f32 to vector<8x32xf32>
    %117 = arith.maximumf %115, %116 : vector<8x32xf32>
    %118 = arith.truncf %117 : vector<8x32xf32> to vector<8x32xbf16>
    %cst_55 = arith.constant dense<0.000000e+00> : vector<8x32xf32>
    %119 = tpu.matmul %118, %5, %cst_55 {dimension_numbers = #tpu.dot_dimension_numbers<[1], [0], [0], [1], [0, 0, 1, 1], [], []>} : vector<8x32xbf16>, vector<32x32xbf16>, vector<8x32xf32> -> vector<8x32xf32>
    %120 = arith.addf %119, %45 : vector<8x32xf32>
    %cst_56 = arith.constant 0.000000e+00 : f32
    %121 = vector.broadcast %cst_56 : f32 to vector<8x32xf32>
    %122 = arith.maximumf %120, %121 : vector<8x32xf32>
    %123 = vector.extract_strided_slice %114 {offsets = [0, 32], sizes = [8, 8], strides = [1, 1]} : vector<8x40xf32> to vector<8x8xf32>
    %124 = arith.truncf %122 : vector<8x32xf32> to vector<8x32xbf16>
    %cst_57 = arith.constant dense<0.000000e+00> : vector<8x8xf32>
    %125 = tpu.matmul %124, %6, %cst_57 {dimension_numbers = #tpu.dot_dimension_numbers<[1], [0], [0], [1], [0, 0, 1, 1], [], []>} : vector<8x32xbf16>, vector<32x8xbf16>, vector<8x8xf32> -> vector<8x8xf32>
    %126 = arith.addf %123, %125 : vector<8x8xf32>
    %127 = arith.addf %126, %47 : vector<8x8xf32>
    %c3 = arith.constant 3 : index
    %c0_58 = arith.constant 0 : index
    %c0_59 = arith.constant 0 : index
    %128 = vector.load %arg2[%c3, %c0_58, %c0_59] : memref<8x8x8xf32, #tpu.memory_space<vmem>>, vector<1x8x8xf32>
    %129 = vector.shape_cast %128 : vector<1x8x8xf32> to vector<8x8xf32>
    %130 = arith.mulf %129, %127 : vector<8x8xf32>
    %131 = arith.addf %110, %130 : vector<8x8xf32>
    %132 = arith.truncf %131 : vector<8x8xf32> to vector<8x8xbf16>
    %cst_60 = arith.constant dense<0.000000e+00> : vector<8x40xf32>
    %133 = tpu.matmul %132, %3, %cst_60 {dimension_numbers = #tpu.dot_dimension_numbers<[1], [0], [0], [1], [0, 0, 1, 1], [], []>} : vector<8x8xbf16>, vector<8x40xbf16>, vector<8x40xf32> -> vector<8x40xf32>
    %134 = vector.extract_strided_slice %43 {offsets = [32, 0], sizes = [8, 40], strides = [1, 1]} : vector<64x40xf32> to vector<8x40xf32>
    %135 = arith.addf %133, %134 : vector<8x40xf32>
    %136 = vector.extract_strided_slice %135 {offsets = [0, 0], sizes = [8, 32], strides = [1, 1]} : vector<8x40xf32> to vector<8x32xf32>
    %cst_61 = arith.constant 0.000000e+00 : f32
    %137 = vector.broadcast %cst_61 : f32 to vector<8x32xf32>
    %138 = arith.maximumf %136, %137 : vector<8x32xf32>
    %139 = arith.truncf %138 : vector<8x32xf32> to vector<8x32xbf16>
    %cst_62 = arith.constant dense<0.000000e+00> : vector<8x32xf32>
    %140 = tpu.matmul %139, %5, %cst_62 {dimension_numbers = #tpu.dot_dimension_numbers<[1], [0], [0], [1], [0, 0, 1, 1], [], []>} : vector<8x32xbf16>, vector<32x32xbf16>, vector<8x32xf32> -> vector<8x32xf32>
    %141 = arith.addf %140, %45 : vector<8x32xf32>
    %cst_63 = arith.constant 0.000000e+00 : f32
    %142 = vector.broadcast %cst_63 : f32 to vector<8x32xf32>
    %143 = arith.maximumf %141, %142 : vector<8x32xf32>
    %144 = vector.extract_strided_slice %135 {offsets = [0, 32], sizes = [8, 8], strides = [1, 1]} : vector<8x40xf32> to vector<8x8xf32>
    %145 = arith.truncf %143 : vector<8x32xf32> to vector<8x32xbf16>
    %cst_64 = arith.constant dense<0.000000e+00> : vector<8x8xf32>
    %146 = tpu.matmul %145, %6, %cst_64 {dimension_numbers = #tpu.dot_dimension_numbers<[1], [0], [0], [1], [0, 0, 1, 1], [], []>} : vector<8x32xbf16>, vector<32x8xbf16>, vector<8x8xf32> -> vector<8x8xf32>
    %147 = arith.addf %144, %146 : vector<8x8xf32>
    %148 = arith.addf %147, %47 : vector<8x8xf32>
    %c4 = arith.constant 4 : index
    %c0_65 = arith.constant 0 : index
    %c0_66 = arith.constant 0 : index
    %149 = vector.load %arg2[%c4, %c0_65, %c0_66] : memref<8x8x8xf32, #tpu.memory_space<vmem>>, vector<1x8x8xf32>
    %150 = vector.shape_cast %149 : vector<1x8x8xf32> to vector<8x8xf32>
    %151 = arith.mulf %150, %148 : vector<8x8xf32>
    %152 = arith.addf %131, %151 : vector<8x8xf32>
    %153 = arith.truncf %152 : vector<8x8xf32> to vector<8x8xbf16>
    %cst_67 = arith.constant dense<0.000000e+00> : vector<8x40xf32>
    %154 = tpu.matmul %153, %3, %cst_67 {dimension_numbers = #tpu.dot_dimension_numbers<[1], [0], [0], [1], [0, 0, 1, 1], [], []>} : vector<8x8xbf16>, vector<8x40xbf16>, vector<8x40xf32> -> vector<8x40xf32>
    %155 = vector.extract_strided_slice %43 {offsets = [40, 0], sizes = [8, 40], strides = [1, 1]} : vector<64x40xf32> to vector<8x40xf32>
    %156 = arith.addf %154, %155 : vector<8x40xf32>
    %157 = vector.extract_strided_slice %156 {offsets = [0, 0], sizes = [8, 32], strides = [1, 1]} : vector<8x40xf32> to vector<8x32xf32>
    %cst_68 = arith.constant 0.000000e+00 : f32
    %158 = vector.broadcast %cst_68 : f32 to vector<8x32xf32>
    %159 = arith.maximumf %157, %158 : vector<8x32xf32>
    %160 = arith.truncf %159 : vector<8x32xf32> to vector<8x32xbf16>
    %cst_69 = arith.constant dense<0.000000e+00> : vector<8x32xf32>
    %161 = tpu.matmul %160, %5, %cst_69 {dimension_numbers = #tpu.dot_dimension_numbers<[1], [0], [0], [1], [0, 0, 1, 1], [], []>} : vector<8x32xbf16>, vector<32x32xbf16>, vector<8x32xf32> -> vector<8x32xf32>
    %162 = arith.addf %161, %45 : vector<8x32xf32>
    %cst_70 = arith.constant 0.000000e+00 : f32
    %163 = vector.broadcast %cst_70 : f32 to vector<8x32xf32>
    %164 = arith.maximumf %162, %163 : vector<8x32xf32>
    %165 = vector.extract_strided_slice %156 {offsets = [0, 32], sizes = [8, 8], strides = [1, 1]} : vector<8x40xf32> to vector<8x8xf32>
    %166 = arith.truncf %164 : vector<8x32xf32> to vector<8x32xbf16>
    %cst_71 = arith.constant dense<0.000000e+00> : vector<8x8xf32>
    %167 = tpu.matmul %166, %6, %cst_71 {dimension_numbers = #tpu.dot_dimension_numbers<[1], [0], [0], [1], [0, 0, 1, 1], [], []>} : vector<8x32xbf16>, vector<32x8xbf16>, vector<8x8xf32> -> vector<8x8xf32>
    %168 = arith.addf %165, %167 : vector<8x8xf32>
    %169 = arith.addf %168, %47 : vector<8x8xf32>
    %c5 = arith.constant 5 : index
    %c0_72 = arith.constant 0 : index
    %c0_73 = arith.constant 0 : index
    %170 = vector.load %arg2[%c5, %c0_72, %c0_73] : memref<8x8x8xf32, #tpu.memory_space<vmem>>, vector<1x8x8xf32>
    %171 = vector.shape_cast %170 : vector<1x8x8xf32> to vector<8x8xf32>
    %172 = arith.mulf %171, %169 : vector<8x8xf32>
    %173 = arith.addf %152, %172 : vector<8x8xf32>
    %174 = arith.truncf %173 : vector<8x8xf32> to vector<8x8xbf16>
    %cst_74 = arith.constant dense<0.000000e+00> : vector<8x40xf32>
    %175 = tpu.matmul %174, %3, %cst_74 {dimension_numbers = #tpu.dot_dimension_numbers<[1], [0], [0], [1], [0, 0, 1, 1], [], []>} : vector<8x8xbf16>, vector<8x40xbf16>, vector<8x40xf32> -> vector<8x40xf32>
    %176 = vector.extract_strided_slice %43 {offsets = [48, 0], sizes = [8, 40], strides = [1, 1]} : vector<64x40xf32> to vector<8x40xf32>
    %177 = arith.addf %175, %176 : vector<8x40xf32>
    %178 = vector.extract_strided_slice %177 {offsets = [0, 0], sizes = [8, 32], strides = [1, 1]} : vector<8x40xf32> to vector<8x32xf32>
    %cst_75 = arith.constant 0.000000e+00 : f32
    %179 = vector.broadcast %cst_75 : f32 to vector<8x32xf32>
    %180 = arith.maximumf %178, %179 : vector<8x32xf32>
    %181 = arith.truncf %180 : vector<8x32xf32> to vector<8x32xbf16>
    %cst_76 = arith.constant dense<0.000000e+00> : vector<8x32xf32>
    %182 = tpu.matmul %181, %5, %cst_76 {dimension_numbers = #tpu.dot_dimension_numbers<[1], [0], [0], [1], [0, 0, 1, 1], [], []>} : vector<8x32xbf16>, vector<32x32xbf16>, vector<8x32xf32> -> vector<8x32xf32>
    %183 = arith.addf %182, %45 : vector<8x32xf32>
    %cst_77 = arith.constant 0.000000e+00 : f32
    %184 = vector.broadcast %cst_77 : f32 to vector<8x32xf32>
    %185 = arith.maximumf %183, %184 : vector<8x32xf32>
    %186 = vector.extract_strided_slice %177 {offsets = [0, 32], sizes = [8, 8], strides = [1, 1]} : vector<8x40xf32> to vector<8x8xf32>
    %187 = arith.truncf %185 : vector<8x32xf32> to vector<8x32xbf16>
    %cst_78 = arith.constant dense<0.000000e+00> : vector<8x8xf32>
    %188 = tpu.matmul %187, %6, %cst_78 {dimension_numbers = #tpu.dot_dimension_numbers<[1], [0], [0], [1], [0, 0, 1, 1], [], []>} : vector<8x32xbf16>, vector<32x8xbf16>, vector<8x8xf32> -> vector<8x8xf32>
    %189 = arith.addf %186, %188 : vector<8x8xf32>
    %190 = arith.addf %189, %47 : vector<8x8xf32>
    %c6 = arith.constant 6 : index
    %c0_79 = arith.constant 0 : index
    %c0_80 = arith.constant 0 : index
    %191 = vector.load %arg2[%c6, %c0_79, %c0_80] : memref<8x8x8xf32, #tpu.memory_space<vmem>>, vector<1x8x8xf32>
    %192 = vector.shape_cast %191 : vector<1x8x8xf32> to vector<8x8xf32>
    %193 = arith.mulf %192, %190 : vector<8x8xf32>
    %194 = arith.addf %173, %193 : vector<8x8xf32>
    %195 = tpu.concatenate %38, %68, %89, %110, %131, %152, %173, %194 in 0 : vector<8x8xf32>, vector<8x8xf32>, vector<8x8xf32>, vector<8x8xf32>, vector<8x8xf32>, vector<8x8xf32>, vector<8x8xf32>, vector<8x8xf32> -> vector<64x8xf32>
    %196 = arith.truncf %195 : vector<64x8xf32> to vector<64x8xbf16>
    %cst_81 = arith.constant dense<0.000000e+00> : vector<64x34xf32>
    %197 = tpu.matmul %196, %7, %cst_81 {dimension_numbers = #tpu.dot_dimension_numbers<[1], [0], [0], [1], [0, 0, 1, 1], [], []>} : vector<64x8xbf16>, vector<8x34xbf16>, vector<64x34xf32> -> vector<64x34xf32>
    %198 = vector.broadcast %16 : vector<1x34xf32> to vector<64x34xf32>
    %199 = arith.addf %197, %198 : vector<64x34xf32>
    %200 = vector.extract_strided_slice %199 {offsets = [0, 0], sizes = [64, 32], strides = [1, 1]} : vector<64x34xf32> to vector<64x32xf32>
    %cst_82 = arith.constant 0.000000e+00 : f32
    %201 = vector.broadcast %cst_82 : f32 to vector<64x32xf32>
    %202 = arith.maximumf %200, %201 : vector<64x32xf32>
    %203 = arith.truncf %202 : vector<64x32xf32> to vector<64x32xbf16>
    %cst_83 = arith.constant dense<0.000000e+00> : vector<64x32xf32>
    %204 = tpu.matmul %203, %8, %cst_83 {dimension_numbers = #tpu.dot_dimension_numbers<[1], [0], [0], [1], [0, 0, 1, 1], [], []>} : vector<64x32xbf16>, vector<32x32xbf16>, vector<64x32xf32> -> vector<64x32xf32>
    %205 = vector.broadcast %17 : vector<1x32xf32> to vector<64x32xf32>
    %206 = arith.addf %204, %205 : vector<64x32xf32>
    %cst_84 = arith.constant 0.000000e+00 : f32
    %207 = vector.broadcast %cst_84 : f32 to vector<64x32xf32>
    %208 = arith.maximumf %206, %207 : vector<64x32xf32>
    %209 = vector.extract_strided_slice %199 {offsets = [0, 32], sizes = [64, 2], strides = [1, 1]} : vector<64x34xf32> to vector<64x2xf32>
    %210 = arith.truncf %208 : vector<64x32xf32> to vector<64x32xbf16>
    %cst_85 = arith.constant dense<0.000000e+00> : vector<64x2xf32>
    %211 = tpu.matmul %210, %9, %cst_85 {dimension_numbers = #tpu.dot_dimension_numbers<[1], [0], [0], [1], [0, 0, 1, 1], [], []>} : vector<64x32xbf16>, vector<32x2xbf16>, vector<64x2xf32> -> vector<64x2xf32>
    %212 = arith.addf %209, %211 : vector<64x2xf32>
    %213 = vector.broadcast %18 : vector<1x2xf32> to vector<64x2xf32>
    %214 = arith.addf %212, %213 : vector<64x2xf32>
    %c0_86 = arith.constant 0 : index
    %c0_87 = arith.constant 0 : index
    %215 = vector.load %arg5[%c0_86, %c0_87] : memref<64x2xf32, #tpu.memory_space<vmem>>, vector<64x2xf32>
    tpu.vector_store %arg5[%c0_86, %c0_87], %214 {strides = array<i32>} : memref<64x2xf32, #tpu.memory_space<vmem>>, vector<64x2xf32>,
    return
  }
}

</mosaic_0001>

<bundles_post_ra>
// kernel: forward.1
= control target key start
LH: loop header
LB: loop body
LE: loop exit
PB: predicated region body
PF: predicated region fallthrough
CT: control target
= control target key end

     0   :  { %vm79_vm0 = vcmask 1041408   ;;  %v2282_v0 = vmov 0.0   ;;  %vm2283_vm1 = vmmov 0   ;;  %vm75_vm2 = vcmask 162816   ;;  %s2284_s22 = smov 32   ;;  %s2285_s25 = smov 96   ;;  %s2812_s3 = inlined_call_operand.vmem [shape: bf16[272,128], index: 3, kind: input, shape index: {}]   ;;  %s2813_s0 = inlined_call_operand.vmem [shape: f32[8,20], index: 0, kind: input, shape index: {}]   ;;  %s2814_s4 = inlined_call_operand.vmem [shape: f32[72,128], index: 4, kind: input, shape index: {}]   ;;  %s2815_s1 = inlined_call_operand.vmem [shape: f32[64,2], index: 1, kind: input, shape index: {}]   ;;  %s2816_s2 = inlined_call_operand.vmem [shape: f32[8,8,8], index: 2, kind: input, shape index: {}]   ;;  %s2817_s5 = inlined_call_operand.vmem [shape: f32[64,2], index: 5, kind: output, shape index: {}]  }
   0x1   :  { %2040 = vmatprep.subr.bf16.mxu1 %v2282_v0  ;;  %v2268_v1 = vld [vmem:[%s2812_s3 + $0x8] ss:$0 sps:$4 sm:$0x33]   ;;  %2044 = vmatprep.mubr.msk.bf16.mxu1 %vm2283_vm1, %v2282_v0  ;;  %v2269_v3 = vld [vmem:[%s2812_s3] sm:$0xff]   ;;  %v2270_v5 = vld [vmem:[%s2812_s3 + $0x18] sm:$0xff]   ;;  %vm141_vm3 = vcmask 261120  }
   0x2   :  { %2056 = vmatprep.subr.bf16.mxu0 %v2282_v0  ;;  %2060 = vmatprep.mubr.msk.bf16.mxu0 %vm2283_vm1, %v2282_v0  ;;  %v81_v2 = vsel %vm79_vm0, %v2268_v1, 0  ;;  %v60_v4 = vld [vmem:[%s2813_s0] sm:$0xff]  ;;  %v2271_v7 = vld [vmem:[%s2812_s3 + $0x10] sm:$0xff]   ;;  %v2272_v16 = vld [vmem:[%s2812_s3 + $0x28] sm:$0xff]   ;;  %vm285_vm4 = vcmask 1040384   ;;  %vm272_vm5 = vcmask 15360  }
   0x3   :  { %2041 = vmatpush3.bf16.msra.mxu1 %v81_v2  ;;  %v61_v6 = vpack.c.bf16 %v60_v4, %v60_v4  ;;  %v1884_v8 = vld [vmem:[%s2814_s4] ss:$0 sm:$0xff]  ;;  %2057 = vmatpush3.bf16.msra.mxu0 %v2272_v16  ;;  %v1888_v18 = vld [vmem:[%s2814_s4 + $0x8] ss:$0 sm:$0xff]  ;;  %v33_v26 = vld [vmem:[%s2812_s3 + $0x38] sm:$0x1] }
   0x4   :  { %2042 = vmatprep.subr.bf16.mxu1 %v2282_v0  ;;  %2058 = vmatprep.subr.bf16.mxu0 %v2282_v0  ;;  %v2273_v17 = vld [vmem:[%s2812_s3 + $0x20] sm:$0xff]   ;;  %v32_v27 = vld [vmem:[%s2812_s3 + $0x30] sm:$0xf]  ;;  %v287_v28 = vsel %vm285_vm4, %v33_v26, 0  ;;  %v257_v30 = vld [vmem:[%s2815_s1 + $0x8] sm:$0xff]  ;;  %vm369_vm6 = vcmask 1043456  }
   0x5   :  { %v256_v29 = vld [vmem:[%s2815_s1] sm:$0xff]  ;;  %v258_v31 = vld [vmem:[%s2815_s1 + $0x10] sm:$0xff]  ;;  %v259_v33 = vld [vmem:[%s2815_s1 + $0x18] sm:$0xff]  ;;  %v2379_v34 = vsel %vm369_vm6, %v32_v27, 0  ;;  %vm365_vm7 = vcmask 64512  }
   0x6   :  { %v264_v32 = vpack.c.bf16 %v257_v30, %v256_v29  ;;  %v265_v35 = vpack.c.bf16 %v259_v33, %v258_v31  ;;  %v1895_v38 = vld [vmem:[%s2814_s4 + $0x10] ss:$0 sm:$0xff]  ;;  %v2399_v46 = vld [vmem:[%s2812_s3 + $0x48] sm:$0xff]   ;;  %v2409_v48 = vld [vmem:[%s2812_s3 + $0x40] sm:$0xff]  }
   0x7   :  { %2043 = vmatpush3.bf16.msra.mxu1 %v2269_v3  ;;  %2059 = vmatpush3.bf16.msra.mxu0 %v2273_v17  ;;  %v2416_v49 = vld [vmem:[%s2812_s3 + $0x58] sm:$0xff]   ;;  %v260_v50 = vld [vmem:[%s2815_s1 + $0x20] sm:$0xff]  ;;  %v261_v51 = vld [vmem:[%s2815_s1 + $0x28] sm:$0xff] }
   0x8   :  { %2048 = vmatprep.subr.bf16.mxu1 %v2282_v0  ;;  %2074 = vmatprep.subr.bf16.mxu0 %v2282_v0  ;;  %v266_v52 = vpack.c.bf16 %v261_v51, %v260_v50  ;;  %v262_v53 = vld [vmem:[%s2815_s1 + $0x30] sm:$0xff]  ;;  %v263_v54 = vld [vmem:[%s2815_s1 + $0x38] sm:$0xff] }
   0x9   :  { %v267_v55 = vpack.c.bf16 %v263_v54, %v262_v53  ;;  %v2434_v56 = vld [vmem:[%s2812_s3 + $0x50] sm:$0xff]   ;;  %v2448_v58 = vld [vmem:[%s2814_s4 + $0x18] ss:$0 sm:$0xff] }
   0xa   :  { %2045 = vmatmul.mubr.msk.bf16.vlgmr.msra.gmra.mxu1 %vm75_vm2, %v61_v6 }
   0xb   :  { %2049 = vmatpush3.bf16.msra.mxu1 %v2270_v5  ;;  %2052 = vmatprep.mubr.msk.bf16.mxu1 %vm2283_vm1, %v2282_v0 }
   0xc   :  { %2050 = vmatprep.subr.bf16.mxu1 %v2282_v0 }
   0xf   :  { %2051 = vmatpush3.bf16.msra.mxu1 %v2271_v7 }
  0x10   :  { %2262 = vmatprep.subr.msk.bf16.mxu1 %vm285_vm4, %v33_v26 }
  0xca   :  { %v117_v9 = vpop.f32.mrf.mxu1 }
  0xcb   :  { %v118_v10 = vadd.f32 %v1884_v8, %v117_v9 }
  0xcc   :  { %v2046_v11 = vpop.f32.mrf.mxu1 }
  0xcd   :  { %v123_v12 = vmax.f32 %v118_v10, 0.0 }
  0xce   :  { %v120_v13 = vpop.f32.mrf.mxu1 }
  0xcf   :  { %v124_v14 = vpack.c.bf16 %v123_v12, %v123_v12 }
  0xd0   :  { %v2047_v15 = vpop.f32.mrf.mxu1 }
  0xd1   :  { %2053 = vmatmul.mubr.msk.bf16.vlgmr.msra.gmra.mxu1 %vm141_vm3, %v124_v14 }
  0xd2   :  { %2065 = vmatpush3.bf16.msra.mxu1 %v287_v28  ;;  %2066 = vmatprep.mubr.msk.bf16.mxu1 %vm272_vm5, %v264_v32  ;;  %v537_v28 = vld [vmem:[%s2816_s2] sm:$0xff] }
  0xd3   :  { %2088 = vmatprep.subr.bf16.mxu1 %v2282_v0 }
  0xd9   :  { %2067 = vmatmul.mubr.msk.bf16.vlgmr.msra.gmra.mxu1 %vm272_vm5, %v265_v35 }
  0xda   :  { %2089 = vmatpush3.bf16.msra.mxu1 %v2416_v49  ;;  %2070 = vmatprep.mubr.msk.bf16.mxu1 %vm272_vm5, %v266_v52 }
  0xdb   :  { %2090 = vmatprep.subr.bf16.mxu1 %v2282_v0 }
  0xde   :  { %2091 = vmatpush3.bf16.msra.mxu1 %v2434_v56 }
  0xdf   :  { %2102 = vmatprep.subr.bf16.mxu1 %v2282_v0 }
  0xe1   :  { %2071 = vmatmul.mubr.msk.bf16.gmra.mxu1 %vm272_vm5, %v267_v55 }
  0xe2   :  { %2092 = vmatprep.mubr.msk.bf16.mxu1 %vm2283_vm1, %v2282_v0 }
 0x191   :  { %v179_v19 = vpop.f32.mrf.mxu1 }
 0x192   :  { %v180_v20 = vadd.f32 %v1888_v18, %v179_v19  ;;  %v1902_v18 = vld [vmem:[%s2814_s4 + $0x28] ss:$0 sm:$0xff] }
 0x193   :  { %v2054_v21 = vpop.f32.mrf.mxu1 }
 0x194   :  { %v185_v22 = vmax.f32 %v180_v20, 0.0 }
 0x195   :  { %v182_v23 = vpop.f32.mrf.mxu1 }
 0x196   :  { %v186_v24 = vpack.c.bf16 %v185_v22, %v185_v22 }
 0x197   :  { %v2055_v25 = vpop.f32.mrf.mxu1 }
 0x198   :  { %2061 = vmatmul.mubr.msk.bf16.vlgmr.msra.gmra.mxu0 %vm141_vm3, %v186_v24 }
 0x199   :  { %2076 = vmatprep.mubr.msk.bf16.mxu0 %vm2283_vm1, %v2282_v0  ;;  %2075 = vmatpush3.bf16.msra.mxu0 %v2379_v34  ;;  %v2443_v57 = vpop.f32.mrf.mxu1 }
 0x19a   :  { %2080 = vmatprep.subr.bf16.mxu0 %v2282_v0 }
 0x19b   :  { %v323_v59 = vpop.f32.mrf.mxu1 }
 0x19c   :  { %v324_v60 = vadd.f32 %v2448_v58, %v323_v59 }
 0x19d   :  { %v2456_v5 = vpop.f32.mrf.mxu1 }
 0x19f   :  { %v326_v6 = vpop.f32.mrf.mxu1 }
 0x1a1   :  { %v2458_v7 = vpop.f32.mrf.mxu1 }
 0x1a3   :  { %v2460_v8 = vpop.f32.mrf.mxu1 }
 0x1a5   :  { %v2073_v9 = vpop.f32.mrf.mxu1 }
 0x1a7   :  { %v2479_v19 = vpop.f32.mrf.mxu1 }
 0x258   :  { %v236_v36 = vpop.f32.mrf.mxu0 }
 0x259   :  { %243 = vrot.lane.b32.xlu0 %v236_v36, %s2284_s22  ;;  %v327_v36 = vadd.f32 %v2448_v58, %v326_v6 }
 0x25a   :  { %v2062_v37 = vpop.f32.mrf.mxu0 }
 0x25c   :  { %v239_v39 = vpop.f32.mrf.mxu0 }
 0x25d   :  { %252 = vrot.lane.b32.xlu0 %v1895_v38, %s2284_s22 }
 0x25e   :  { %v2063_v40 = vpop.f32.mrf.mxu0 }
 0x261   :  { %533 = vrot.lane.b32.xlu0 %v1902_v18, %s2284_s22 }
 0x2cb   :  { %v244_v41 = vpop.permute.xlu0 %243 }
 0x2cc   :  { %v246_v42 = vadd.f32 %v244_v41, %v118_v10  ;;  %v2465_v10 = vld [vmem:[%s2814_s4 + $0x20] ss:$0 sm:$0xff] }
 0x2cf   :  { %v253_v43 = vpop.permute.xlu0 %252 }
 0x2d0   :  { %v2391_v44 = vadd.f32 %v253_v43, %v246_v42 }
 0x2d2   :  { %v361_v45 = vpack.c.bf16 %v2391_v44, %v2391_v44 }
 0x2d3   :  { %v2482_v25 = vpop.permute.xlu0 %533 }
 0x2d4   :  { %363 = vrot.lane.b32.xlu1 %v361_v45, %s2285_s25 }
 0x346   :  { %v364_v47 = vpop.permute.xlu1 %363 }
 0x347   :  { %2077 = vmatmul.mubr.msk.bf16.vlgmr.msra.gmra.mxu0 %vm365_vm7, %v364_v47 }
 0x348   :  { %2081 = vmatpush3.bf16.msra.mxu0 %v2399_v46  ;;  %2084 = vmatprep.mubr.msk.bf16.mxu0 %vm2283_vm1, %v2282_v0 }
 0x349   :  { %2082 = vmatprep.subr.bf16.mxu0 %v2282_v0 }
 0x34c   :  { %2083 = vmatpush3.bf16.msra.mxu0 %v2409_v48 }
 0x34d   :  { %2096 = vmatprep.subr.bf16.mxu0 %v2282_v0 }
 0x407   :  { %v407_v61 = vpop.f32.mrf.mxu0 }
 0x408   :  { %v408_v62 = vadd.f32 %v407_v61, %v324_v60 }
 0x409   :  { %v2078_v63 = vpop.f32.mrf.mxu0 }
 0x40a   :  { %v413_v1 = vmax.f32 %v408_v62, 0.0 }
 0x40b   :  { %v410_v2 = vpop.f32.mrf.mxu0 }
 0x40c   :  { %v414_v3 = vpack.c.bf16 %v413_v1, %v413_v1  ;;  %v1913_v2 = vld [vmem:[%s2816_s2 + $0x8] sm:$0xff] }
 0x40d   :  { %v2079_v4 = vpop.f32.mrf.mxu0 }
 0x40e   :  { %2085 = vmatmul.mubr.msk.bf16.vlgmr.msra.gmra.mxu0 %vm141_vm3, %v414_v3 }
 0x40f   :  { %2097 = vmatpush3.bf16.msra.mxu0 %v2379_v34  ;;  %2098 = vmatprep.mubr.msk.bf16.mxu0 %vm2283_vm1, %v2282_v0 }
 0x410   :  { %2110 = vmatprep.subr.bf16.mxu0 %v2282_v0 }
 0x4ce   :  { %v464_v11 = vpop.f32.mrf.mxu0 }
 0x4cf   :  { %v465_v12 = vadd.f32 %v2465_v10, %v464_v11 }
 0x4d0   :  { %v2086_v13 = vpop.f32.mrf.mxu0 }
 0x4d1   :  { %v470_v14 = vmax.f32 %v465_v12, 0.0  ;;  %v332_v13 = vadd.f32 %v2443_v57, %v2448_v58 }
 0x4d2   :  { %v467_v15 = vpop.f32.mrf.mxu0 }
 0x4d3   :  { %v471_v16 = vpack.c.bf16 %v470_v14, %v470_v14 }
 0x4d4   :  { %v2087_v17 = vpop.f32.mrf.mxu0 }
 0x4d5   :  { %2093 = vmatmul.mubr.msk.bf16.vlgmr.msra.gmra.mxu1 %vm141_vm3, %v471_v16 }
 0x4d6   :  { %2103 = vmatpush3.bf16.msra.mxu1 %v2399_v46  ;;  %2106 = vmatprep.mubr.msk.bf16.mxu1 %vm2283_vm1, %v2282_v0 }
 0x4d7   :  { %2104 = vmatprep.subr.bf16.mxu1 %v2282_v0 }
 0x4da   :  { %2105 = vmatpush3.bf16.msra.mxu1 %v2409_v48 }
 0x4db   :  { %2118 = vmatprep.subr.bf16.mxu1 %v2282_v0 }
 0x595   :  { %v521_v20 = vpop.f32.mrf.mxu1 }
 0x596   :  { %528 = vrot.lane.b32.xlu1 %v521_v20, %s2284_s22 }
 0x597   :  { %v2094_v21 = vpop.f32.mrf.mxu1 }
 0x599   :  { %v524_v22 = vpop.f32.mrf.mxu1 }
 0x59b   :  { %v2095_v23 = vpop.f32.mrf.mxu1 }
 0x608   :  { %v529_v24 = vpop.permute.xlu1 %528 }
 0x609   :  { %v531_v26 = vadd.f32 %v529_v24, %v408_v62 }
 0x60b   :  { %v536_v27 = vadd.f32 %v2482_v25, %v531_v26 }
 0x60d   :  { %539 = vrot.lane.b32.xlu1 %v536_v27, %s2285_s25 }
 0x67f   :  { %v540_v29 = vpop.permute.xlu1 %539 }
 0x680   :  { %v542_v30 = vmul.f32 %v540_v29, %v537_v28 }
 0x682   :  { %544 = vrot.lane.b32.xlu0 %v542_v30, %s2284_s22 }
 0x6f4   :  { %v545_v31 = vpop.permute.xlu0 %544 }
 0x6f5   :  { %v2491_v32 = vadd.f32 %v545_v31, %v2391_v44 }
 0x6f7   :  { %v548_v33 = vpack.c.bf16 %v2491_v32, %v2491_v32 }
 0x6f9   :  { %550 = vrot.lane.b32.xlu1 %v548_v33, %s2285_s25 }
 0x76b   :  { %v551_v35 = vpop.permute.xlu1 %550 }
 0x76c   :  { %2099 = vmatmul.mubr.msk.bf16.vlgmr.msra.gmra.mxu0 %vm365_vm7, %v551_v35 }
 0x76d   :  { %2111 = vmatpush3.bf16.msra.mxu0 %v2416_v49  ;;  %2114 = vmatprep.mubr.msk.bf16.mxu0 %vm2283_vm1, %v2282_v0 }
 0x76e   :  { %2112 = vmatprep.subr.bf16.mxu0 %v2282_v0 }
 0x771   :  { %2113 = vmatpush3.bf16.msra.mxu0 %v2434_v56 }
 0x772   :  { %2124 = vmatprep.subr.bf16.mxu0 %v2282_v0 }
 0x82c   :  { %v589_v37 = vpop.f32.mrf.mxu0 }
 0x82d   :  { %v590_v38 = vadd.f32 %v589_v37, %v327_v36 }
 0x82e   :  { %v2100_v39 = vpop.f32.mrf.mxu0 }
 0x82f   :  { %v595_v40 = vmax.f32 %v590_v38, 0.0 }
 0x830   :  { %v592_v41 = vpop.f32.mrf.mxu0 }
 0x831   :  { %v596_v42 = vpack.c.bf16 %v595_v40, %v595_v40 }
 0x832   :  { %v2101_v43 = vpop.f32.mrf.mxu0 }
 0x833   :  { %2107 = vmatmul.mubr.msk.bf16.vlgmr.msra.gmra.mxu1 %vm141_vm3, %v596_v42 }
 0x834   :  { %2119 = vmatpush3.bf16.msra.mxu1 %v2379_v34  ;;  %2120 = vmatprep.mubr.msk.bf16.mxu1 %vm2283_vm1, %v2282_v0 }
 0x835   :  { %2132 = vmatprep.subr.bf16.mxu1 %v2282_v0 }
 0x8f3   :  { %v634_v45 = vpop.f32.mrf.mxu1 }
 0x8f4   :  { %v635_v47 = vadd.f32 %v2465_v10, %v634_v45 }
 0x8f5   :  { %v2108_v50 = vpop.f32.mrf.mxu1 }
 0x8f6   :  { %v640_v51 = vmax.f32 %v635_v47, 0.0  ;;  %v335_v47 = vadd.f32 %v2456_v5, %v2448_v58 }
 0x8f7   :  { %v637_v52 = vpop.f32.mrf.mxu1 }
 0x8f8   :  { %v641_v53 = vpack.c.bf16 %v640_v51, %v640_v51 }
 0x8f9   :  { %v2109_v54 = vpop.f32.mrf.mxu1 }
 0x8fa   :  { %2115 = vmatmul.mubr.msk.bf16.vlgmr.msra.gmra.mxu0 %vm141_vm3, %v641_v53 }
 0x8fb   :  { %2125 = vmatpush3.bf16.msra.mxu0 %v2399_v46  ;;  %2128 = vmatprep.mubr.msk.bf16.mxu0 %vm2283_vm1, %v2282_v0 }
 0x8fc   :  { %2126 = vmatprep.subr.bf16.mxu0 %v2282_v0 }
 0x8ff   :  { %2127 = vmatpush3.bf16.msra.mxu0 %v2409_v48 }
 0x900   :  { %2140 = vmatprep.subr.bf16.mxu0 %v2282_v0 }
 0x9ba   :  { %v679_v55 = vpop.f32.mrf.mxu0 }
 0x9bb   :  { %686 = vrot.lane.b32.xlu0 %v679_v55, %s2284_s22 }
 0x9bc   :  { %v2116_v59 = vpop.f32.mrf.mxu0 }
 0x9be   :  { %v682_v60 = vpop.f32.mrf.mxu0 }
 0x9c0   :  { %v2117_v61 = vpop.f32.mrf.mxu0 }
 0xa2d   :  { %v687_v62 = vpop.permute.xlu0 %686 }
 0xa2e   :  { %v689_v63 = vadd.f32 %v687_v62, %v590_v38  ;;  %v1917_v38 = vld [vmem:[%s2816_s2 + $0x10] sm:$0xff] }
 0xa30   :  { %v690_v1 = vadd.f32 %v689_v63, %v2482_v25 }
 0xa32   :  { %694 = vrot.lane.b32.xlu1 %v690_v1, %s2285_s25 }
 0xaa4   :  { %v695_v3 = vpop.permute.xlu1 %694 }
 0xaa5   :  { %v697_v4 = vmul.f32 %v1913_v2, %v695_v3 }
 0xaa7   :  { %699 = vrot.lane.b32.xlu0 %v697_v4, %s2284_s22 }
 0xb19   :  { %v700_v6 = vpop.permute.xlu0 %699 }
 0xb1a   :  { %v2525_v9 = vadd.f32 %v700_v6, %v2491_v32 }
 0xb1c   :  { %v703_v11 = vpack.c.bf16 %v2525_v9, %v2525_v9 }
 0xb1e   :  { %705 = vrot.lane.b32.xlu1 %v703_v11, %s2285_s25 }
 0xb90   :  { %v706_v12 = vpop.permute.xlu1 %705 }
 0xb91   :  { %2121 = vmatmul.mubr.msk.bf16.vlgmr.msra.gmra.mxu1 %vm365_vm7, %v706_v12 }
 0xb92   :  { %2133 = vmatpush3.bf16.msra.mxu1 %v2416_v49  ;;  %2136 = vmatprep.mubr.msk.bf16.mxu1 %vm2283_vm1, %v2282_v0 }
 0xb93   :  { %2134 = vmatprep.subr.bf16.mxu1 %v2282_v0 }
 0xb96   :  { %2135 = vmatpush3.bf16.msra.mxu1 %v2434_v56 }
 0xb97   :  { %2146 = vmatprep.subr.bf16.mxu1 %v2282_v0 }
 0xc51   :  { %v744_v14 = vpop.f32.mrf.mxu1 }
 0xc52   :  { %v745_v15 = vadd.f32 %v744_v14, %v332_v13 }
 0xc53   :  { %v2122_v16 = vpop.f32.mrf.mxu1 }
 0xc54   :  { %v750_v17 = vmax.f32 %v745_v15, 0.0 }
 0xc55   :  { %v747_v18 = vpop.f32.mrf.mxu1 }
 0xc56   :  { %v751_v20 = vpack.c.bf16 %v750_v17, %v750_v17 }
 0xc57   :  { %v2123_v21 = vpop.f32.mrf.mxu1 }
 0xc58   :  { %2129 = vmatmul.mubr.msk.bf16.vlgmr.msra.gmra.mxu0 %vm141_vm3, %v751_v20 }
 0xc59   :  { %2141 = vmatpush3.bf16.msra.mxu0 %v2379_v34  ;;  %2142 = vmatprep.mubr.msk.bf16.mxu0 %vm2283_vm1, %v2282_v0 }
 0xc5a   :  { %2154 = vmatprep.subr.bf16.mxu0 %v2282_v0 }
 0xd18   :  { %v789_v22 = vpop.f32.mrf.mxu0 }
 0xd19   :  { %v790_v23 = vadd.f32 %v2465_v10, %v789_v22 }
 0xd1a   :  { %v2130_v57 = vpop.f32.mrf.mxu0 }
 0xd1b   :  { %v795_v24 = vmax.f32 %v790_v23, 0.0  ;;  %v340_v23 = vadd.f32 %v2448_v58, %v2460_v8 }
 0xd1c   :  { %v792_v26 = vpop.f32.mrf.mxu0 }
 0xd1d   :  { %v796_v27 = vpack.c.bf16 %v795_v24, %v795_v24 }
 0xd1e   :  { %v2131_v28 = vpop.f32.mrf.mxu0 }
 0xd1f   :  { %2137 = vmatmul.mubr.msk.bf16.vlgmr.msra.gmra.mxu1 %vm141_vm3, %v796_v27 }
 0xd20   :  { %2147 = vmatpush3.bf16.msra.mxu1 %v2399_v46  ;;  %2150 = vmatprep.mubr.msk.bf16.mxu1 %vm2283_vm1, %v2282_v0 }
 0xd21   :  { %2148 = vmatprep.subr.bf16.mxu1 %v2282_v0 }
 0xd24   :  { %2149 = vmatpush3.bf16.msra.mxu1 %v2409_v48 }
 0xd25   :  { %2162 = vmatprep.subr.bf16.mxu1 %v2282_v0 }
 0xddf   :  { %v834_v29 = vpop.f32.mrf.mxu1 }
 0xde0   :  { %841 = vrot.lane.b32.xlu0 %v834_v29, %s2284_s22 }
 0xde1   :  { %v2138_v30 = vpop.f32.mrf.mxu1 }
 0xde3   :  { %v837_v31 = vpop.f32.mrf.mxu1 }
 0xde5   :  { %v2139_v33 = vpop.f32.mrf.mxu1 }
 0xe52   :  { %v842_v35 = vpop.permute.xlu0 %841 }
 0xe53   :  { %v844_v36 = vadd.f32 %v842_v35, %v745_v15  ;;  %v1921_v15 = vld [vmem:[%s2816_s2 + $0x18] sm:$0xff] }
 0xe55   :  { %v845_v37 = vadd.f32 %v844_v36, %v2482_v25 }
 0xe57   :  { %849 = vrot.lane.b32.xlu1 %v845_v37, %s2285_s25 }
 0xec9   :  { %v850_v39 = vpop.permute.xlu1 %849 }
 0xeca   :  { %v852_v40 = vmul.f32 %v1917_v38, %v850_v39 }
 0xecc   :  { %854 = vrot.lane.b32.xlu0 %v852_v40, %s2284_s22 }
 0xf3e   :  { %v855_v41 = vpop.permute.xlu0 %854 }
 0xf3f   :  { %v2560_v42 = vadd.f32 %v855_v41, %v2525_v9 }
 0xf41   :  { %v858_v43 = vpack.c.bf16 %v2560_v42, %v2560_v42 }
 0xf43   :  { %860 = vrot.lane.b32.xlu1 %v858_v43, %s2285_s25 }
 0xfb5   :  { %v861_v45 = vpop.permute.xlu1 %860 }
 0xfb6   :  { %2143 = vmatmul.mubr.msk.bf16.vlgmr.msra.gmra.mxu0 %vm365_vm7, %v861_v45 }
 0xfb7   :  { %2155 = vmatpush3.bf16.msra.mxu0 %v2416_v49  ;;  %2158 = vmatprep.mubr.msk.bf16.mxu0 %vm2283_vm1, %v2282_v0 }
 0xfb8   :  { %2156 = vmatprep.subr.bf16.mxu0 %v2282_v0 }
 0xfbb   :  { %2157 = vmatpush3.bf16.msra.mxu0 %v2434_v56 }
 0xfbc   :  { %2168 = vmatprep.subr.bf16.mxu0 %v2282_v0 }
0x1076   :  { %v899_v50 = vpop.f32.mrf.mxu0 }
0x1077   :  { %v900_v51 = vadd.f32 %v899_v50, %v335_v47 }
0x1078   :  { %v2144_v52 = vpop.f32.mrf.mxu0 }
0x1079   :  { %v905_v53 = vmax.f32 %v900_v51, 0.0 }
0x107a   :  { %v902_v54 = vpop.f32.mrf.mxu0 }
0x107b   :  { %v906_v55 = vpack.c.bf16 %v905_v53, %v905_v53 }
0x107c   :  { %v2145_v59 = vpop.f32.mrf.mxu0 }
0x107d   :  { %2151 = vmatmul.mubr.msk.bf16.vlgmr.msra.gmra.mxu1 %vm141_vm3, %v906_v55 }
0x107e   :  { %2163 = vmatpush3.bf16.msra.mxu1 %v2379_v34  ;;  %2164 = vmatprep.mubr.msk.bf16.mxu1 %vm2283_vm1, %v2282_v0 }
0x107f   :  { %2176 = vmatprep.subr.bf16.mxu1 %v2282_v0 }
0x113d   :  { %v944_v60 = vpop.f32.mrf.mxu1 }
0x113e   :  { %v945_v61 = vadd.f32 %v2465_v10, %v944_v60 }
0x113f   :  { %v2152_v5 = vpop.f32.mrf.mxu1 }
0x1140   :  { %v950_v62 = vmax.f32 %v945_v61, 0.0  ;;  %v343_v61 = vadd.f32 %v2448_v58, %v2479_v19 }
0x1141   :  { %v947_v63 = vpop.f32.mrf.mxu1 }
0x1142   :  { %v951_v1 = vpack.c.bf16 %v950_v62, %v950_v62 }
0x1143   :  { %v2153_v2 = vpop.f32.mrf.mxu1 }
0x1144   :  { %2159 = vmatmul.mubr.msk.bf16.vlgmr.msra.gmra.mxu0 %vm141_vm3, %v951_v1 }
0x1145   :  { %2169 = vmatpush3.bf16.msra.mxu0 %v2399_v46  ;;  %2172 = vmatprep.mubr.msk.bf16.mxu0 %vm2283_vm1, %v2282_v0 }
0x1146   :  { %2170 = vmatprep.subr.bf16.mxu0 %v2282_v0 }
0x1149   :  { %2171 = vmatpush3.bf16.msra.mxu0 %v2409_v48 }
0x114a   :  { %2184 = vmatprep.subr.bf16.mxu0 %v2282_v0 }
0x1204   :  { %v989_v3 = vpop.f32.mrf.mxu0 }
0x1205   :  { %996 = vrot.lane.b32.xlu0 %v989_v3, %s2284_s22 }
0x1206   :  { %v2160_v4 = vpop.f32.mrf.mxu0 }
0x1208   :  { %v992_v6 = vpop.f32.mrf.mxu0 }
0x120a   :  { %v2161_v11 = vpop.f32.mrf.mxu0 }
0x1277   :  { %v997_v12 = vpop.permute.xlu0 %996 }
0x1278   :  { %v999_v13 = vadd.f32 %v997_v12, %v900_v51  ;;  %v1925_v51 = vld [vmem:[%s2816_s2 + $0x20] sm:$0xff] }
0x127a   :  { %v1000_v14 = vadd.f32 %v999_v13, %v2482_v25 }
0x127c   :  { %1004 = vrot.lane.b32.xlu1 %v1000_v14, %s2285_s25 }
0x12ee   :  { %v1005_v16 = vpop.permute.xlu1 %1004 }
0x12ef   :  { %v1007_v17 = vmul.f32 %v1921_v15, %v1005_v16 }
0x12f1   :  { %1009 = vrot.lane.b32.xlu0 %v1007_v17, %s2284_s22 }
0x1363   :  { %v1010_v18 = vpop.permute.xlu0 %1009 }
0x1364   :  { %v2595_v20 = vadd.f32 %v1010_v18, %v2560_v42 }
0x1366   :  { %v1013_v21 = vpack.c.bf16 %v2595_v20, %v2595_v20 }
0x1368   :  { %1015 = vrot.lane.b32.xlu1 %v1013_v21, %s2285_s25 }
0x13da   :  { %v1016_v22 = vpop.permute.xlu1 %1015 }
0x13db   :  { %2165 = vmatmul.mubr.msk.bf16.vlgmr.msra.gmra.mxu1 %vm365_vm7, %v1016_v22 }
0x13dc   :  { %2177 = vmatpush3.bf16.msra.mxu1 %v2416_v49  ;;  %2180 = vmatprep.mubr.msk.bf16.mxu1 %vm2283_vm1, %v2282_v0 }
0x13dd   :  { %2178 = vmatprep.subr.bf16.mxu1 %v2282_v0 }
0x13e0   :  { %2179 = vmatpush3.bf16.msra.mxu1 %v2434_v56 }
0x13e1   :  { %2190 = vmatprep.subr.bf16.mxu1 %v2282_v0 }
0x149b   :  { %v1054_v57 = vpop.f32.mrf.mxu1 }
0x149c   :  { %v1055_v24 = vadd.f32 %v1054_v57, %v340_v23 }
0x149d   :  { %v2166_v26 = vpop.f32.mrf.mxu1 }
0x149e   :  { %v1060_v27 = vmax.f32 %v1055_v24, 0.0 }
0x149f   :  { %v1057_v28 = vpop.f32.mrf.mxu1 }
0x14a0   :  { %v1061_v29 = vpack.c.bf16 %v1060_v27, %v1060_v27 }
0x14a1   :  { %v2167_v30 = vpop.f32.mrf.mxu1 }
0x14a2   :  { %2173 = vmatmul.mubr.msk.bf16.vlgmr.msra.gmra.mxu0 %vm141_vm3, %v1061_v29  ;;  %v348_v29 = vadd.f32 %v2458_v7, %v2448_v58 }
0x14a3   :  { %2185 = vmatpush3.bf16.msra.mxu0 %v2379_v34  ;;  %2186 = vmatprep.mubr.msk.bf16.mxu0 %vm2283_vm1, %v2282_v0 }
0x14a4   :  { %2198 = vmatprep.subr.bf16.mxu0 %v2282_v0 }
0x1562   :  { %v1099_v31 = vpop.f32.mrf.mxu0 }
0x1563   :  { %v1100_v33 = vadd.f32 %v2465_v10, %v1099_v31 }
0x1564   :  { %v2174_v8 = vpop.f32.mrf.mxu0 }
0x1565   :  { %v1105_v35 = vmax.f32 %v1100_v33, 0.0 }
0x1566   :  { %v1102_v36 = vpop.f32.mrf.mxu0 }
0x1567   :  { %v1106_v37 = vpack.c.bf16 %v1105_v35, %v1105_v35 }
0x1568   :  { %v2175_v38 = vpop.f32.mrf.mxu0 }
0x1569   :  { %2181 = vmatmul.mubr.msk.bf16.vlgmr.msra.gmra.mxu1 %vm141_vm3, %v1106_v37 }
0x156a   :  { %2191 = vmatpush3.bf16.msra.mxu1 %v2399_v46  ;;  %2194 = vmatprep.mubr.msk.bf16.mxu1 %vm2283_vm1, %v2282_v0 }
0x156b   :  { %2192 = vmatprep.subr.bf16.mxu1 %v2282_v0 }
0x156e   :  { %2193 = vmatpush3.bf16.msra.mxu1 %v2409_v48 }
0x156f   :  { %2206 = vmatprep.subr.bf16.mxu1 %v2282_v0 }
0x1629   :  { %v1144_v39 = vpop.f32.mrf.mxu1 }
0x162a   :  { %1151 = vrot.lane.b32.xlu0 %v1144_v39, %s2284_s22 }
0x162b   :  { %v2182_v40 = vpop.f32.mrf.mxu1 }
0x162d   :  { %v1147_v41 = vpop.f32.mrf.mxu1 }
0x162f   :  { %v2183_v43 = vpop.f32.mrf.mxu1 }
0x169c   :  { %v1152_v45 = vpop.permute.xlu0 %1151 }
0x169d   :  { %v1154_v47 = vadd.f32 %v1152_v45, %v1055_v24 }
0x169f   :  { %v1155_v50 = vadd.f32 %v1154_v47, %v2482_v25 }
0x16a1   :  { %1159 = vrot.lane.b32.xlu1 %v1155_v50, %s2285_s25 }
0x1713   :  { %v1160_v52 = vpop.permute.xlu1 %1159 }
0x1714   :  { %v1162_v53 = vmul.f32 %v1925_v51, %v1160_v52 }
0x1716   :  { %1164 = vrot.lane.b32.xlu0 %v1162_v53, %s2284_s22  ;;  %v42_v53 = vld [vmem:[%s2812_s3 + $0x60] sm:$0xf] }
0x1788   :  { %v1165_v54 = vpop.permute.xlu0 %1164 }
0x1789   :  { %v2630_v55 = vadd.f32 %v1165_v54, %v2595_v20 }
0x178b   :  { %v1168_v59 = vpack.c.bf16 %v2630_v55, %v2630_v55  ;;  %v1480_v52 = vpack.c.bf16 %v2630_v55, %v2595_v20 }
0x178d   :  { %1170 = vrot.lane.b32.xlu1 %v1168_v59, %s2285_s25 }
0x17ff   :  { %v1171_v60 = vpop.permute.xlu1 %1170 }
0x1800   :  { %2187 = vmatmul.mubr.msk.bf16.vlgmr.msra.gmra.mxu0 %vm365_vm7, %v1171_v60 }
0x1801   :  { %2199 = vmatpush3.bf16.msra.mxu0 %v2416_v49  ;;  %2202 = vmatprep.mubr.msk.bf16.mxu0 %vm2283_vm1, %v2282_v0 }
0x1802   :  { %2200 = vmatprep.subr.bf16.mxu0 %v2282_v0 }
0x1805   :  { %2201 = vmatpush3.bf16.msra.mxu0 %v2434_v56 }
0x1806   :  { %2212 = vmatprep.subr.bf16.mxu0 %v2282_v0 }
0x18c0   :  { %v1209_v5 = vpop.f32.mrf.mxu0 }
0x18c1   :  { %v1210_v62 = vadd.f32 %v1209_v5, %v343_v61 }
0x18c2   :  { %v2188_v63 = vpop.f32.mrf.mxu0 }
0x18c3   :  { %v1215_v1 = vmax.f32 %v1210_v62, 0.0  ;;  %v2278_v63 = vld [vmem:[%s2812_s3 + $0x70] sm:$0xff]  }
0x18c4   :  { %v1212_v2 = vpop.f32.mrf.mxu0 }
0x18c5   :  { %v1216_v3 = vpack.c.bf16 %v1215_v1, %v1215_v1 }
0x18c6   :  { %v2189_v4 = vpop.f32.mrf.mxu0 }
0x18c7   :  { %2195 = vmatmul.mubr.msk.bf16.vlgmr.msra.gmra.mxu1 %vm141_vm3, %v1216_v3  ;;  %v1934_v3 = vld [vmem:[%s2814_s4 + $0x30] ss:$0 sm:$0xff] }
0x18c8   :  { %2207 = vmatpush3.bf16.msra.mxu1 %v2379_v34  ;;  %2208 = vmatprep.mubr.msk.bf16.mxu1 %vm2283_vm1, %v2282_v0 }
0x18c9   :  { %2220 = vmatprep.subr.bf16.mxu1 %v2282_v0 }
0x1987   :  { %v1254_v6 = vpop.f32.mrf.mxu1 }
0x1988   :  { %v1255_v11 = vadd.f32 %v2465_v10, %v1254_v6 }
0x1989   :  { %v2196_v19 = vpop.f32.mrf.mxu1 }
0x198a   :  { %v1260_v12 = vmax.f32 %v1255_v11, 0.0 }
0x198b   :  { %v1257_v13 = vpop.f32.mrf.mxu1 }
0x198c   :  { %v1261_v14 = vpack.c.bf16 %v1260_v12, %v1260_v12 }
0x198d   :  { %v2197_v15 = vpop.f32.mrf.mxu1 }
0x198e   :  { %2203 = vmatmul.mubr.msk.bf16.vlgmr.msra.gmra.mxu0 %vm141_vm3, %v1261_v14 }
0x198f   :  { %2213 = vmatpush3.bf16.msra.mxu0 %v2399_v46  ;;  %2216 = vmatprep.mubr.msk.bf16.mxu0 %vm2283_vm1, %v2282_v0  ;;  %v1929_v46 = vld [vmem:[%s2816_s2 + $0x28] sm:$0xff] }
0x1990   :  { %2214 = vmatprep.subr.bf16.mxu0 %v2282_v0 }
0x1993   :  { %2215 = vmatpush3.bf16.msra.mxu0 %v2409_v48 }
0x1994   :  { %2263 = vmatprep.subr.msk.bf16.mxu0 %vm369_vm6, %v42_v53 }
0x1a4e   :  { %v1299_v34 = vpop.f32.mrf.mxu0 }
0x1a4f   :  { %1306 = vrot.lane.b32.xlu0 %v1299_v34, %s2284_s22 }
0x1a50   :  { %v2204_v16 = vpop.f32.mrf.mxu0 }
0x1a52   :  { %v1302_v17 = vpop.f32.mrf.mxu0 }
0x1a54   :  { %v2205_v18 = vpop.f32.mrf.mxu0 }
0x1ac1   :  { %v1307_v21 = vpop.permute.xlu0 %1306 }
0x1ac2   :  { %v1309_v22 = vadd.f32 %v1307_v21, %v1210_v62  ;;  %v2280_v21 = vld [vmem:[%s2812_s3 + $0x80] sm:$0xff]  }
0x1ac4   :  { %v1310_v23 = vadd.f32 %v1309_v22, %v2482_v25  ;;  %v2281_v22 = vld [vmem:[%s2812_s3 + $0x78] sm:$0xff]  }
0x1ac6   :  { %1314 = vrot.lane.b32.xlu1 %v1310_v23, %s2285_s25 }
0x1b38   :  { %v1315_v57 = vpop.permute.xlu1 %1314 }
0x1b39   :  { %v1317_v24 = vmul.f32 %v1929_v46, %v1315_v57 }
0x1b3b   :  { %1319 = vrot.lane.b32.xlu0 %v1317_v24, %s2284_s22 }
0x1bad   :  { %v1320_v48 = vpop.permute.xlu0 %1319 }
0x1bae   :  { %v1322_v26 = vadd.f32 %v1320_v48, %v2630_v55  ;;  %v1479_v55 = vpack.c.bf16 %v2560_v42, %v2525_v9  ;;  %v2279_v9 = vld [vmem:[%s2812_s3 + $0x68] sm:$0xff]  }
0x1bb0   :  { %v1323_v27 = vpack.c.bf16 %v1322_v26, %v1322_v26 }
0x1bb2   :  { %1325 = vrot.lane.b32.xlu1 %v1323_v27, %s2285_s25 }
0x1c24   :  { %v1326_v28 = vpop.permute.xlu1 %1325 }
0x1c25   :  { %2209 = vmatmul.mubr.msk.bf16.vlgmr.msra.gmra.mxu1 %vm365_vm7, %v1326_v28 }
0x1c26   :  { %2221 = vmatpush3.bf16.msra.mxu1 %v2416_v49  ;;  %2224 = vmatprep.mubr.msk.bf16.mxu1 %vm2283_vm1, %v2282_v0 }
0x1c27   :  { %2222 = vmatprep.subr.bf16.mxu1 %v2282_v0 }
0x1c2a   :  { %2223 = vmatpush3.bf16.msra.mxu1 %v2434_v56 }
0x1c2b   :  { %2238 = vmatprep.subr.bf16.mxu1 %v2278_v63 }
0x1ce5   :  { %v1364_v30 = vpop.f32.mrf.mxu1 }
0x1ce6   :  { %v1365_v31 = vadd.f32 %v1364_v30, %v348_v29 }
0x1ce7   :  { %v2210_v33 = vpop.f32.mrf.mxu1 }
0x1ce8   :  { %v1370_v8 = vmax.f32 %v1365_v31, 0.0 }
0x1ce9   :  { %v1367_v35 = vpop.f32.mrf.mxu1 }
0x1cea   :  { %v1371_v36 = vpack.c.bf16 %v1370_v8, %v1370_v8 }
0x1ceb   :  { %v2211_v37 = vpop.f32.mrf.mxu1 }
0x1cec   :  { %2217 = vmatmul.mubr.msk.bf16.vlgmr.msra.gmra.mxu0 %vm141_vm3, %v1371_v36 }
0x1dac   :  { %v1409_v49 = vpop.f32.mrf.mxu0 }
0x1dad   :  { %v1410_v38 = vadd.f32 %v2465_v10, %v1409_v49  ;;  %v1478_v10 = vpack.c.bf16 %v2491_v32, %v2391_v44  ;;  %v1933_v44 = vld [vmem:[%s2816_s2 + $0x30] sm:$0xff]  ;;  %v1939_v49 = vld [vmem:[%s2814_s4 + $0x38] ss:$0 sm:$0xff] }
0x1dae   :  { %v2218_v39 = vpop.f32.mrf.mxu0 }
0x1daf   :  { %v1415_v40 = vmax.f32 %v1410_v38, 0.0 }
0x1db0   :  { %v1412_v0 = vpop.f32.mrf.mxu0 }
0x1db1   :  { %v1416_v41 = vpack.c.bf16 %v1415_v40, %v1415_v40 }
0x1db2   :  { %v2219_v56 = vpop.f32.mrf.mxu0 }
0x1db3   :  { %2225 = vmatmul.mubr.msk.bf16.vlgmr.msra.gmra.mxu1 %vm141_vm3, %v1416_v41 }
0x1db4   :  { %2239 = vmatpush3.bf16.msra.mxu1 %v2278_v63 }
0x1db5   :  { %2240 = vmatprep.subr.bf16.mxu1 %v2279_v9 }
0x1db8   :  { %2241 = vmatpush3.bf16.msra.mxu1 %v2279_v9 }
0x1e73   :  { %v1454_v58 = vpop.f32.mrf.mxu1 }
0x1e74   :  { %1461 = vrot.lane.b32.xlu0 %v1454_v58, %s2284_s22 }
0x1e75   :  { %v2226_v7 = vpop.f32.mrf.mxu1 }
0x1e77   :  { %v1457_v43 = vpop.f32.mrf.mxu1 }
0x1e79   :  { %v2227_v45 = vpop.f32.mrf.mxu1 }
0x1ee6   :  { %v1462_v47 = vpop.permute.xlu0 %1461 }
0x1ee7   :  { %v1464_v50 = vadd.f32 %v1462_v47, %v1365_v31 }
0x1ee9   :  { %v1465_v51 = vadd.f32 %v1464_v50, %v2482_v25  ;;  %v1511_v25 = vsel %vm369_vm6, %v42_v53, 0 }
0x1eea   :  { %2229 = vmatpush3.bf16.msra.mxu0 %v1511_v25 }
0x1eeb   :  { %1469 = vrot.lane.b32.xlu1 %v1465_v51, %s2285_s25  ;;  %2250 = vmatprep.subr.bf16.mxu0 %v2280_v21 }
0x1eef   :  { %1490 = vrot.lane.b32.xlu1 %v1478_v10, %s2285_s25 }
0x1ef3   :  { %1494 = vrot.lane.b32.xlu1 %v1480_v52, %s2285_s25 }
0x1f5d   :  { %v1470_v32 = vpop.permute.xlu1 %1469 }
0x1f5e   :  { %v1472_v54 = vmul.f32 %v1933_v44, %v1470_v32 }
0x1f60   :  { %1474 = vrot.lane.b32.xlu0 %v1472_v54, %s2284_s22 }
0x1f61   :  { %v1491_v20 = vpop.permute.xlu1 %1490 }
0x1f62   :  { %2230 = vmatprep.mubr.msk.bf16.mxu0 %vm365_vm7, %v1491_v20 }
0x1f64   :  { %1492 = vrot.lane.b32.xlu0 %v1479_v55, %s2285_s25 }
0x1f65   :  { %v1495_v62 = vpop.permute.xlu1 %1494 }
0x1fd2   :  { %v1475_v59 = vpop.permute.xlu0 %1474 }
0x1fd3   :  { %v1477_v60 = vadd.f32 %v1475_v59, %v1322_v26 }
0x1fd5   :  { %v1481_v61 = vpack.c.bf16 %v1477_v60, %v1322_v26 }
0x1fd6   :  { %v1493_v5 = vpop.permute.xlu0 %1492 }
0x1fd7   :  { %1496 = vrot.lane.b32.xlu0 %v1481_v61, %s2285_s25  ;;  %2231 = vmatmul.mubr.msk.bf16.vlgmr.msra.gmra.mxu0 %vm365_vm7, %v1493_v5 }
0x1fd8   :  { %2234 = vmatprep.mubr.msk.bf16.mxu0 %vm365_vm7, %v1495_v62  ;;  %2251 = vmatpush3.bf16.msra.mxu0 %v2280_v21 }
0x1fd9   :  { %2252 = vmatprep.subr.bf16.mxu0 %v2281_v22 }
0x1fdc   :  { %2253 = vmatpush3.bf16.msra.mxu0 %v2281_v22 }
0x2049   :  { %v1497_v42 = vpop.permute.xlu0 %1496 }
0x204a   :  { %2235 = vmatmul.mubr.msk.bf16.gmra.mxu0 %vm365_vm7, %v1497_v42 }
0x2097   :  { %v2232_v1 = vpop.f32.mrf.mxu0 }
0x2098   :  { %v2715_v19 = vadd.f32 %v2232_v1, %v1934_v3 }
0x2099   :  { %v1547_v2 = vpop.f32.mrf.mxu0 }
0x209a   :  { %v2711_v6 = vadd.f32 %v1934_v3, %v1547_v2  ;;  %v1580_v16 = vmax.f32 %v2715_v19, 0.0 }
0x209b   :  { %v2233_v4 = vpop.f32.mrf.mxu0 }
0x209c   :  { %v2713_v11 = vadd.f32 %v2233_v4, %v1934_v3  ;;  %v1578_v15 = vmax.f32 %v2711_v6, 0.0  ;;  %v1952_v4 = vld [vmem:[%s2814_s4 + $0x40] ss:$0 sm:$0xff] }
0x209d   :  { %v1550_v12 = vpop.f32.mrf.mxu0 }
0x209e   :  { %v2717_v13 = vadd.f32 %v1934_v3, %v1550_v12  ;;  %v1581_v14 = vmax.f32 %v2713_v11, 0.0 }
0x20a0   :  { %v1579_v34 = vmax.f32 %v2717_v13, 0.0  ;;  %v1587_v18 = vpack.c.bf16 %v1581_v14, %v1580_v16 }
0x20a2   :  { %v1586_v17 = vpack.c.bf16 %v1579_v34, %v1578_v15 }
0x20a4   :  { %2242 = vmatprep.mubr.msk.bf16.mxu1 %vm141_vm3, %v1586_v17 }
0x20a5   :  { %2243 = vmatmul.mubr.msk.bf16.vlgmr.msra.gmra.mxu1 %vm141_vm3, %v1587_v18 }
0x210a   :  { %v2236_v23 = vpop.f32.mrf.mxu0 }
0x210b   :  { %v2735_v26 = vadd.f32 %v2236_v23, %v1934_v3 }
0x210c   :  { %v1563_v46 = vpop.f32.mrf.mxu0 }
0x210d   :  { %v2731_v24 = vadd.f32 %v1934_v3, %v1563_v46  ;;  %v1584_v33 = vmax.f32 %v2735_v26, 0.0 }
0x210e   :  { %v2237_v57 = vpop.f32.mrf.mxu0 }
0x210f   :  { %v2733_v48 = vadd.f32 %v2237_v57, %v1934_v3  ;;  %v1582_v30 = vmax.f32 %v2731_v24, 0.0 }
0x2110   :  { %v1566_v27 = vpop.f32.mrf.mxu0 }
0x2111   :  { %v2737_v28 = vadd.f32 %v1934_v3, %v1566_v27  ;;  %v1585_v29 = vmax.f32 %v2733_v48, 0.0 }
0x2113   :  { %v1583_v31 = vmax.f32 %v2737_v28, 0.0  ;;  %v1589_v35 = vpack.c.bf16 %v1585_v29, %v1584_v33 }
0x2115   :  { %v1588_v8 = vpack.c.bf16 %v1583_v31, %v1582_v30 }
0x2117   :  { %2246 = vmatprep.mubr.msk.bf16.mxu1 %vm141_vm3, %v1588_v8 }
0x2118   :  { %2247 = vmatmul.mubr.msk.bf16.gmra.mxu1 %vm141_vm3, %v1589_v35 }
0x2165   :  { %v2244_v36 = vpop.f32.mrf.mxu1 }
0x2166   :  { %v1661_v0 = vadd.f32 %v2244_v36, %v1939_v49 }
0x2167   :  { %v1652_v37 = vpop.f32.mrf.mxu1 }
0x2168   :  { %v1653_v39 = vadd.f32 %v1939_v49, %v1652_v37  ;;  %v1685_v45 = vmax.f32 %v1661_v0, 0.0 }
0x2169   :  { %v2245_v38 = vpop.f32.mrf.mxu1 }
0x216a   :  { %v1664_v40 = vadd.f32 %v2245_v38, %v1939_v49  ;;  %v1683_v7 = vmax.f32 %v1653_v39, 0.0 }
0x216b   :  { %v1655_v41 = vpop.f32.mrf.mxu1 }
0x216c   :  { %v1656_v56 = vadd.f32 %v1939_v49, %v1655_v41  ;;  %v1686_v58 = vmax.f32 %v1664_v40, 0.0 }
0x216e   :  { %v1684_v43 = vmax.f32 %v1656_v56, 0.0  ;;  %v1692_v50 = vpack.c.bf16 %v1686_v58, %v1685_v45 }
0x2170   :  { %v1691_v47 = vpack.c.bf16 %v1684_v43, %v1683_v7 }
0x2172   :  { %2254 = vmatprep.mubr.msk.bf16.mxu0 %vm141_vm3, %v1691_v47 }
0x2173   :  { %2255 = vmatmul.mubr.msk.bf16.vlgmr.msra.gmra.mxu0 %vm141_vm3, %v1692_v50 }
0x21d8   :  { %v2248_v51 = vpop.f32.mrf.mxu1 }
0x21d9   :  { %v1677_v44 = vadd.f32 %v2248_v51, %v1939_v49 }
0x21da   :  { %v1668_v10 = vpop.f32.mrf.mxu1 }
0x21db   :  { %v1669_v53 = vadd.f32 %v1939_v49, %v1668_v10  ;;  %v1689_v60 = vmax.f32 %v1677_v44, 0.0 }
0x21dc   :  { %v2249_v52 = vpop.f32.mrf.mxu1 }
0x21dd   :  { %v1680_v25 = vadd.f32 %v2249_v52, %v1939_v49  ;;  %v1687_v55 = vmax.f32 %v1669_v53, 0.0 }
0x21de   :  { %v1671_v32 = vpop.f32.mrf.mxu1 }
0x21df   :  { %v1672_v54 = vadd.f32 %v1939_v49, %v1671_v32  ;;  %v1690_v20 = vmax.f32 %v1680_v25, 0.0 }
0x21e1   :  { %v1688_v59 = vmax.f32 %v1672_v54, 0.0  ;;  %v1694_v5 = vpack.c.bf16 %v1690_v20, %v1689_v60 }
0x21e3   :  { %v1693_v61 = vpack.c.bf16 %v1688_v59, %v1687_v55 }
0x21e5   :  { %2258 = vmatprep.mubr.msk.bf16.mxu0 %vm141_vm3, %v1693_v61 }
0x21e6   :  { %2259 = vmatmul.mubr.msk.bf16.gmra.mxu0 %vm141_vm3, %v1694_v5 }
0x2233   :  { %v2256_v62 = vpop.f32.mrf.mxu0 }
0x2234   :  { %1796 = vrot.lane.b32.xlu1 %v2256_v62, %s2284_s22 }
0x2235   :  { %v1753_v63 = vpop.f32.mrf.mxu0 }
0x2237   :  { %v2257_v9 = vpop.f32.mrf.mxu0 }
0x2238   :  { %1792 = vrot.lane.b32.xlu1 %v1753_v63, %s2284_s22  ;;  %1798 = vrot.lane.b32.xlu0 %v2257_v9, %s2284_s22 }
0x2239   :  { %v1756_v42 = vpop.f32.mrf.mxu0 }
0x223c   :  { %1794 = vrot.lane.b32.xlu0 %v1756_v42, %s2284_s22 }
0x22a6   :  { %v2260_v1 = vpop.f32.mrf.mxu0  ;;  %v1797_v14 = vpop.permute.xlu1 %1796 }
0x22a7   :  { %1804 = vrot.lane.b32.xlu1 %v2260_v1, %s2284_s22  ;;  %v1818_v29 = vadd.f32 %v1797_v14, %v2715_v19 }
0x22a8   :  { %v1769_v2 = vpop.f32.mrf.mxu0 }
0x22aa   :  { %v2261_v3 = vpop.f32.mrf.mxu0  ;;  %v1793_v15 = vpop.permute.xlu1 %1792 }
0x22ab   :  { %1800 = vrot.lane.b32.xlu1 %v1769_v2, %s2284_s22  ;;  %v1799_v34 = vpop.permute.xlu0 %1798  ;;  %v1816_v21 = vadd.f32 %v1793_v15, %v2711_v6 }
0x22ac   :  { %v1772_v12 = vpop.f32.mrf.mxu0  ;;  %v1819_v30 = vadd.f32 %v1799_v34, %v2713_v11 }
0x22ad   :  { %1802 = vrot.lane.b32.xlu0 %v1772_v12, %s2284_s22 }
0x22af   :  { %1829 = vrot.lane.b32.xlu1 %v1952_v4, %s2284_s22  ;;  %v1795_v17 = vpop.permute.xlu0 %1794 }
0x22b0   :  { %v1817_v22 = vadd.f32 %v1795_v17, %v2717_v13 }
0x22b1   :  { %1806 = vrot.lane.b32.xlu0 %v2261_v3, %s2284_s22 }
0x2319   :  { %v1805_v16 = vpop.permute.xlu1 %1804 }
0x231a   :  { %v1822_v11 = vadd.f32 %v1805_v16, %v2735_v26 }
0x231d   :  { %v1801_v18 = vpop.permute.xlu1 %1800 }
0x231e   :  { %v1820_v6 = vadd.f32 %v1801_v18, %v2731_v24 }
0x231f   :  { %v1803_v23 = vpop.permute.xlu0 %1802 }
0x2320   :  { %v1821_v31 = vadd.f32 %v1803_v23, %v2737_v28 }
0x2321   :  { %v1830_v46 = vpop.permute.xlu1 %1829 }
0x2322   :  { %v1833_v57 = vadd.f32 %v1830_v46, %v1817_v22  ;;  %v1832_v27 = vadd.f32 %v1830_v46, %v1816_v21  ;;  %v1835_v33 = vadd.f32 %v1830_v46, %v1819_v30  ;;  %v1834_v8 = vadd.f32 %v1830_v46, %v1818_v29 }
0x2323   :  { %v1807_v35 = vpop.permute.xlu0 %1806  ;;  %v1836_v19 = vadd.f32 %v1830_v46, %v1820_v6  ;;  %v1837_v36 = vadd.f32 %v1830_v46, %v1821_v31  ;;  %v1838_v37 = vadd.f32 %v1830_v46, %v1822_v11 }
0x2324   :  { %1850 = vrot.lane.b32.xlu1 %v1833_v57, %s2285_s25  ;;  %1848 = vrot.lane.b32.xlu0 %v1832_v27, %s2285_s25  ;;  %v1823_v13 = vadd.f32 %v1807_v35, %v2733_v48 }
0x2326   :  { %v1839_v28 = vadd.f32 %v1830_v46, %v1823_v13 }
0x2328   :  { %1854 = vrot.lane.b32.xlu1 %v1835_v33, %s2285_s25  ;;  %1852 = vrot.lane.b32.xlu0 %v1834_v8, %s2285_s25 }
0x232c   :  { %1856 = vrot.lane.b32.xlu0 %v1836_v19, %s2285_s25  ;;  %1858 = vrot.lane.b32.xlu1 %v1837_v36, %s2285_s25 }
0x2330   :  { %1860 = vrot.lane.b32.xlu0 %v1838_v37, %s2285_s25  ;;  %1862 = vrot.lane.b32.xlu1 %v1839_v28, %s2285_s25 }
0x2396   :  { %v1851_v24 = vpop.permute.xlu1 %1850  ;;  %v1849_v49 = vpop.permute.xlu0 %1848 }
0x2397   :  { %1873 = vst.msk [vmem:[%s2817_s5 + $0x8] sm:$0xff] %vm272_vm5, %v1851_v24  ;;  %1872 = vst.msk [vmem:[%s2817_s5] sm:$0xff] %vm272_vm5, %v1849_v49 }
0x239a   :  { %v1855_v48 = vpop.permute.xlu1 %1854  ;;  %v1853_v26 = vpop.permute.xlu0 %1852 }
0x239b   :  { %1875 = vst.msk [vmem:[%s2817_s5 + $0x18] sm:$0xff] %vm272_vm5, %v1855_v48  ;;  %1874 = vst.msk [vmem:[%s2817_s5 + $0x10] sm:$0xff] %vm272_vm5, %v1853_v26 }
0x239e   :  { %v1859_v38 = vpop.permute.xlu1 %1858  ;;  %v1857_v39 = vpop.permute.xlu0 %1856 }
0x239f   :  { %1877 = vst.msk [vmem:[%s2817_s5 + $0x28] sm:$0xff] %vm272_vm5, %v1859_v38  ;;  %1876 = vst.msk [vmem:[%s2817_s5 + $0x20] sm:$0xff] %vm272_vm5, %v1857_v39 }
0x23a2   :  { %v1863_v40 = vpop.permute.xlu1 %1862  ;;  %v1861_v0 = vpop.permute.xlu0 %1860 }
0x23a3   :  { %1879 = vst.msk [vmem:[%s2817_s5 + $0x38] sm:$0xff] %vm272_vm5, %v1863_v40  ;;  %1878 = vst.msk [vmem:[%s2817_s5 + $0x30] sm:$0xff] %vm272_vm5, %v1861_v0 }

</bundles_post_ra>
